<compile_context>
chip_gen: v7x
topology: tpu7x:2x2x1
jax: 0.10.0
libtpu: 0.0.40
codegen_flags: <defaults>
</compile_context>

<pallas_src>
import math
import jax
import jax.numpy as jnp
import numpy as np
from jax import lax
from jax.experimental import pallas as pl
from jax.experimental.pallas import tpu as pltpu

NUM_BUCKETS = 16
MAX_DISTANCE = 16


# ----------------------------------------------------------------------------
# Pallas kernel
# ----------------------------------------------------------------------------
def _build_mha_kernel(depth):
    scale = 1.0 / math.sqrt(depth)
    neg = -1000000000.0

    def kernel(q_in_ref, k_in_ref, v_in_ref,
               wq_ref, bq_ref, wk_ref, bk_ref, wv_ref, bv_ref,
               wo_ref, bo_ref, bias_ref, mask_ref, rp_ref,
               out_ref, att_ref):
        h = pl.program_id(1)

        # per-head projections: (S, E) @ (E, D) on the MXU, f32 accumulation
        q = jnp.dot(q_in_ref[0], wq_ref[0], preferred_element_type=jnp.float32) + bq_ref[0]
        k = jnp.dot(k_in_ref[0], wk_ref[0], preferred_element_type=jnp.float32) + bk_ref[0]
        v = jnp.dot(v_in_ref[0], wv_ref[0], preferred_element_type=jnp.float32) + bv_ref[0]

        # attention logits: q @ k^T (contract last dims; no materialized transpose)
        qk = lax.dot_general(q.astype(jnp.bfloat16), k.astype(jnp.bfloat16),
                             dimension_numbers=(((1,), (1,)), ((), ())),
                             preferred_element_type=jnp.float32)          # (S, S)
        logits = (qk + bias_ref[0]) * scale
        logits = logits + mask_ref[0, 0] * neg
        logits = logits + rp_ref[0] * neg
        att_ref[0, 0] = logits                                            # pre-softmax "attention"

        # numerically-stable softmax (f32; exp on EUP, approx reciprocal for denom)
        m = jnp.max(logits, axis=-1, keepdims=True)
        p = jnp.exp(logits - m)
        denom = jnp.sum(p, axis=-1, keepdims=True)
        p = p * pl.reciprocal(denom, approx=True)

        ctx = jnp.dot(p.astype(jnp.bfloat16), v.astype(jnp.bfloat16),
                      preferred_element_type=jnp.float32)                 # (S, D)
        contrib = jnp.dot(ctx.astype(jnp.bfloat16), wo_ref[0],
                          preferred_element_type=jnp.float32)             # (S, E)

        # accumulate the output projection across heads (output block resident across h)
        @pl.when(h == 0)
        def _():
            out_ref[0] = contrib + bo_ref[...]

        @pl.when(h > 0)
        def _():
            out_ref[0] = out_ref[0] + contrib

    return kernel


# ----------------------------------------------------------------------------
# Glue (plain JAX): relative-position bias / rp mask (tiny, data-independent)
# ----------------------------------------------------------------------------
def _relative_position_bucket(relative_position, num_buckets, max_distance):
    # bidirectional=False branch of the PyTorch code; `max_distance` = self.max_distance
    rp = -jnp.minimum(relative_position, 0)                      # max(i - j, 0), int32
    max_exact = num_buckets // 2
    is_small = rp < max_exact
    rp_f = jnp.maximum(rp, 1).astype(jnp.float32)                # avoid log(0); unused where is_small
    if_large = max_exact + (jnp.log(rp_f / max_exact)
                            / math.log(max_distance / max_exact)
                            * (num_buckets - max_exact)).astype(jnp.int32)
    if_large = jnp.minimum(if_large, num_buckets - 1)
    return jnp.where(is_small, rp, if_large)


def compute_bias(q_len, k_len, rel_bias_table, num_buckets=NUM_BUCKETS,
                 max_distance=MAX_DISTANCE):
    ctx_pos = jnp.arange(q_len, dtype=jnp.int32)[:, None]
    mem_pos = jnp.arange(k_len, dtype=jnp.int32)[None, :]
    rel_pos = mem_pos - ctx_pos
    bucket = _relative_position_bucket(rel_pos, num_buckets, max_distance)
    bucket_sym = bucket.T + bucket
    rp_mask = (bucket_sym == (max_distance - 1)).astype(jnp.float32)
    values = rel_bias_table[bucket_sym]                          # (Sq, Sk, H)
    values = jnp.transpose(values, (2, 0, 1))                    # (H, Sq, Sk)
    return values, rp_mask[None]                                 # (H,S,S), (1,S,S)


# ----------------------------------------------------------------------------
# pallas_call wrapper
# ----------------------------------------------------------------------------
def mha_forward(query, key, value, mask, params, num_heads):
    wq, bq, wk, bk, wv, bv, wo, bo, rel_bias_table = params
    B, S, E = query.shape
    H = num_heads
    D = E // H

    pos_bias, rp_mask = compute_bias(S, S, rel_bias_table)

    # per-head weight layout; matmul operands in bf16 (f32 accumulation in-kernel)
    wq_h = wq.reshape(E, H, D).transpose(1, 0, 2).astype(jnp.bfloat16)    # (H, E, D)
    wk_h = wk.reshape(E, H, D).transpose(1, 0, 2).astype(jnp.bfloat16)
    wv_h = wv.reshape(E, H, D).transpose(1, 0, 2).astype(jnp.bfloat16)
    wo_h = wo.reshape(H, D, E).astype(jnp.bfloat16)                       # (H, D, E)
    bq_h = bq.reshape(H, 1, D)
    bk_h = bk.reshape(H, 1, D)
    bv_h = bv.reshape(H, 1, D)
    bo_2 = bo.reshape(1, E)

    q_bf = query.astype(jnp.bfloat16)
    k_bf = key.astype(jnp.bfloat16)
    v_bf = value.astype(jnp.bfloat16)
    mask_f = mask.astype(jnp.float32)

    kernel = _build_mha_kernel(D)

    out, att = pl.pallas_call(
        kernel,
        out_shape=(jax.ShapeDtypeStruct((B, S, E), jnp.float32),
                   jax.ShapeDtypeStruct((B, H, S, S), jnp.float32)),
        grid_spec=pltpu.PrefetchScalarGridSpec(
            num_scalar_prefetch=0,
            grid=(B, H),
            in_specs=[
                pl.BlockSpec((1, S, E), lambda b, h: (b, 0, 0)),        # query
                pl.BlockSpec((1, S, E), lambda b, h: (b, 0, 0)),        # key
                pl.BlockSpec((1, S, E), lambda b, h: (b, 0, 0)),        # value
                pl.BlockSpec((1, E, D), lambda b, h: (h, 0, 0)),        # Wq head slice
                pl.BlockSpec((1, 1, D), lambda b, h: (h, 0, 0)),        # bq
                pl.BlockSpec((1, E, D), lambda b, h: (h, 0, 0)),        # Wk
                pl.BlockSpec((1, 1, D), lambda b, h: (h, 0, 0)),        # bk
                pl.BlockSpec((1, E, D), lambda b, h: (h, 0, 0)),        # Wv
                pl.BlockSpec((1, 1, D), lambda b, h: (h, 0, 0)),        # bv
                pl.BlockSpec((1, D, E), lambda b, h: (h, 0, 0)),        # Wo head slice
                pl.BlockSpec((1, E), lambda b, h: (0, 0)),              # bo
                pl.BlockSpec((1, S, S), lambda b, h: (h, 0, 0)),        # position bias
                pl.BlockSpec((1, 1, S, S), lambda b, h: (b, 0, 0, 0)),  # mask
                pl.BlockSpec((1, S, S), lambda b, h: (0, 0, 0)),        # rp_mask
            ],
            out_specs=(
                pl.BlockSpec((1, S, E), lambda b, h: (b, 0, 0)),        # outputs (acc over h)
                pl.BlockSpec((1, 1, S, S), lambda b, h: (b, h, 0, 0)),  # attention logits
            ),
        ),
        compiler_params=pltpu.CompilerParams(
            dimension_semantics=("parallel", "arbitrary")),
    )(q_bf, k_bf, v_bf, wq_h, bq_h, wk_h, bk_h, wv_h, bv_h, wo_h, bo_2,
      pos_bias, mask_f, rp_mask)
    return out, att


# ----------------------------------------------------------------------------
# Pure-JAX reference (mirrors PyTorch semantics, f32 HIGHEST precision)
# ----------------------------------------------------------------------------
def mha_reference(query, key, value, mask, params, num_heads):
    wq, bq, wk, bk, wv, bv, wo, bo, rel_bias_table = params
    B, S, E = query.shape
    H = num_heads
    D = E // H
    hi = lax.Precision.HIGHEST

    def linear(x, w, b):
        return jnp.einsum('bse,ef->bsf', x, w, precision=hi) + b

    def split(x):
        return x.reshape(B, S, H, D).transpose(0, 2, 1, 3)

    q, k, v = split(linear(query, wq, bq)), split(linear(key, wk, bk)), split(linear(value, wv, bv))
    pos_bias, rp_mask = compute_bias(S, S, rel_bias_table)
    qk = jnp.einsum('bhqd,bhkd->bhqk', q, k, precision=hi)
    logits = (qk + pos_bias[None]) / math.sqrt(D)
    logits = logits + mask * (-1000000000.0) + rp_mask[None] * (-1000000000.0)
    attn_w = jax.nn.softmax(logits, axis=-1)
    ctx = jnp.einsum('bhqk,bhkd->bhqd', attn_w, v, precision=hi)
    ctx = ctx.transpose(0, 2, 1, 3).reshape(B, S, E)
    out = jnp.einsum('bse,ef->bsf', ctx, wo, precision=hi) + bo
    return out, logits


# ----------------------------------------------------------------------------
# Deterministic parameter init (PyTorch nn.Linear / nn.Embedding style)
# ----------------------------------------------------------------------------
def init_params(key, E, H):
    ks = jax.random.split(key, 9)

    def u(k, shape, fan_in):
        bound = 1.0 / math.sqrt(fan_in)
        return jax.random.uniform(k, shape, jnp.float32, -bound, bound)

    # weights stored in (in, out) layout
    wq = u(ks[0], (E, E), E); bq = u(ks[1], (E,), E)
    wk = u(ks[2], (E, E), E); bk = u(ks[3], (E,), E)
    wv = u(ks[4], (E, E), E); bv = u(ks[5], (E,), E)
    wo = u(ks[6], (E, E), E); bo = u(ks[7], (E,), E)
    rel_bias_table = jax.random.normal(ks[8], (NUM_BUCKETS, H), jnp.float32)
    return (wq, bq, wk, bk, wv, bv, wo, bo, rel_bias_table)


if __name__ == "__main__":
    # lane-dense small config: seq = embed = 128 (full 128-lane tiles), 4 heads -> depth 32
    B, S, E, H = 2, 128, 128, 4

    key0 = jax.random.PRNGKey(0)
    kp, kq, kk, kv = jax.random.split(key0, 4)
    params = init_params(kp, E, H)

    query = jax.random.uniform(kq, (B, S, E), jnp.float32, -1.0, 1.0)
    key_in = jax.random.uniform(kk, (B, S, E), jnp.float32, -1.0, 1.0)
    value = jax.random.uniform(kv, (B, S, E), jnp.float32, -1.0, 1.0)

    # key-padding mask: batch 1 has its last 16 key positions masked (1.0 = masked)
    mask = jnp.zeros((B, 1, S, S), jnp.float32)
    mask = mask.at[1, :, :, S - 16:].set(1.0)

    out, att = mha_forward(query, key_in, value, mask, params, H)
    out = jax.block_until_ready(out)
    att = jax.block_until_ready(att)

    out_ref, att_ref = mha_reference(query, key_in, value, mask, params, H)
    out_ref = jax.block_until_ready(out_ref)
    att_ref = jax.block_until_ready(att_ref)

    np.testing.assert_allclose(np.asarray(out), np.asarray(out_ref), rtol=2e-2, atol=2e-2)
    np.testing.assert_allclose(np.asarray(att), np.asarray(att_ref), rtol=2e-2, atol=2e-2)
    assert out.shape == (B, S, E) and att.shape == (B, H, S, S)
    print("KERNEL_OK")
</pallas_src>

<mosaic_0001>
module attributes {stable_mosaic.version = 11 : i64} {
  func.func @kernel(%arg0: i32, %arg1: i32, %arg2: memref<1x128x128xbf16, #tpu.memory_space<vmem>>, %arg3: memref<1x128x128xbf16, #tpu.memory_space<vmem>>, %arg4: memref<1x128x128xbf16, #tpu.memory_space<vmem>>, %arg5: memref<1x128x32xbf16, #tpu.memory_space<vmem>>, %arg6: memref<1x1x32xf32, #tpu.memory_space<vmem>>, %arg7: memref<1x128x32xbf16, #tpu.memory_space<vmem>>, %arg8: memref<1x1x32xf32, #tpu.memory_space<vmem>>, %arg9: memref<1x128x32xbf16, #tpu.memory_space<vmem>>, %arg10: memref<1x1x32xf32, #tpu.memory_space<vmem>>, %arg11: memref<1x32x128xbf16, #tpu.memory_space<vmem>>, %arg12: memref<1x128xf32, #tpu.memory_space<vmem>>, %arg13: memref<1x128x128xf32, #tpu.memory_space<vmem>>, %arg14: memref<1x1x128x128xf32, #tpu.memory_space<vmem>>, %arg15: memref<1x128x128xf32, #tpu.memory_space<vmem>>, %arg16: memref<1x128x128xf32, #tpu.memory_space<vmem>>, %arg17: memref<1x1x128x128xf32, #tpu.memory_space<vmem>>) attributes {dimension_semantics = [#tpu.dimension_semantics<parallel>, #tpu.dimension_semantics<arbitrary>], iteration_bounds = array<i64: 2, 4>, scalar_prefetch = 0 : i64, scratch_operands = 0 : i64, tpu.core_type = #tpu.core_type<tc>, window_params = [{transform_indices = @transform_0, window_bounds = array<i64: 1, 128, 128>}, {transform_indices = @transform_1, window_bounds = array<i64: 1, 128, 128>}, {transform_indices = @transform_2, window_bounds = array<i64: 1, 128, 128>}, {transform_indices = @transform_3, window_bounds = array<i64: 1, 128, 32>}, {transform_indices = @transform_4, window_bounds = array<i64: 1, 1, 32>}, {transform_indices = @transform_5, window_bounds = array<i64: 1, 128, 32>}, {transform_indices = @transform_6, window_bounds = array<i64: 1, 1, 32>}, {transform_indices = @transform_7, window_bounds = array<i64: 1, 128, 32>}, {transform_indices = @transform_8, window_bounds = array<i64: 1, 1, 32>}, {transform_indices = @transform_9, window_bounds = array<i64: 1, 32, 128>}, {pipeline_mode = #tpu.pipeline_mode<synchronous>, transform_indices = @transform_10, window_bounds = array<i64: 1, 128>}, {transform_indices = @transform_11, window_bounds = array<i64: 1, 128, 128>}, {transform_indices = @transform_12, window_bounds = array<i64: 1, 1, 128, 128>}, {pipeline_mode = #tpu.pipeline_mode<synchronous>, transform_indices = @transform_13, window_bounds = array<i64: 1, 128, 128>}, {transform_indices = @transform_14, window_bounds = array<i64: 1, 128, 128>}, {transform_indices = @transform_15, window_bounds = array<i64: 1, 1, 128, 128>}]} {
    %c0 = arith.constant 0 : index
    %c0_0 = arith.constant 0 : index
    %c0_1 = arith.constant 0 : index
    %0 = vector.load %arg2[%c0, %c0_0, %c0_1] : memref<1x128x128xbf16, #tpu.memory_space<vmem>>, vector<1x128x128xbf16>
    %1 = vector.shape_cast %0 : vector<1x128x128xbf16> to vector<128x128xbf16>
    %c0_2 = arith.constant 0 : index
    %c0_3 = arith.constant 0 : index
    %c0_4 = arith.constant 0 : index
    %2 = vector.load %arg5[%c0_2, %c0_3, %c0_4] : memref<1x128x32xbf16, #tpu.memory_space<vmem>>, vector<1x128x32xbf16>
    %3 = vector.shape_cast %2 : vector<1x128x32xbf16> to vector<128x32xbf16>
    %cst = arith.constant dense<0.000000e+00> : vector<128x32xf32>
    %4 = tpu.matmul %1, %3, %cst {dimension_numbers = #tpu.dot_dimension_numbers<[1], [0], [0], [1], [0, 0, 1, 1], [], []>} : vector<128x128xbf16>, vector<128x32xbf16>, vector<128x32xf32> -> vector<128x32xf32>
    %c0_5 = arith.constant 0 : index
    %c0_6 = arith.constant 0 : index
    %c0_7 = arith.constant 0 : index
    %5 = vector.load %arg6[%c0_5, %c0_6, %c0_7] : memref<1x1x32xf32, #tpu.memory_space<vmem>>, vector<1x1x32xf32>
    %6 = vector.shape_cast %5 : vector<1x1x32xf32> to vector<1x32xf32>
    %7 = vector.broadcast %6 : vector<1x32xf32> to vector<128x32xf32>
    %8 = arith.addf %4, %7 : vector<128x32xf32>
    %c0_8 = arith.constant 0 : index
    %c0_9 = arith.constant 0 : index
    %c0_10 = arith.constant 0 : index
    %9 = vector.load %arg3[%c0_8, %c0_9, %c0_10] : memref<1x128x128xbf16, #tpu.memory_space<vmem>>, vector<1x128x128xbf16>
    %10 = vector.shape_cast %9 : vector<1x128x128xbf16> to vector<128x128xbf16>
    %c0_11 = arith.constant 0 : index
    %c0_12 = arith.constant 0 : index
    %c0_13 = arith.constant 0 : index
    %11 = vector.load %arg7[%c0_11, %c0_12, %c0_13] : memref<1x128x32xbf16, #tpu.memory_space<vmem>>, vector<1x128x32xbf16>
    %12 = vector.shape_cast %11 : vector<1x128x32xbf16> to vector<128x32xbf16>
    %cst_14 = arith.constant dense<0.000000e+00> : vector<128x32xf32>
    %13 = tpu.matmul %10, %12, %cst_14 {dimension_numbers = #tpu.dot_dimension_numbers<[1], [0], [0], [1], [0, 0, 1, 1], [], []>} : vector<128x128xbf16>, vector<128x32xbf16>, vector<128x32xf32> -> vector<128x32xf32>
    %c0_15 = arith.constant 0 : index
    %c0_16 = arith.constant 0 : index
    %c0_17 = arith.constant 0 : index
    %14 = vector.load %arg8[%c0_15, %c0_16, %c0_17] : memref<1x1x32xf32, #tpu.memory_space<vmem>>, vector<1x1x32xf32>
    %15 = vector.shape_cast %14 : vector<1x1x32xf32> to vector<1x32xf32>
    %16 = vector.broadcast %15 : vector<1x32xf32> to vector<128x32xf32>
    %17 = arith.addf %13, %16 : vector<128x32xf32>
    %c0_18 = arith.constant 0 : index
    %c0_19 = arith.constant 0 : index
    %c0_20 = arith.constant 0 : index
    %18 = vector.load %arg4[%c0_18, %c0_19, %c0_20] : memref<1x128x128xbf16, #tpu.memory_space<vmem>>, vector<1x128x128xbf16>
    %19 = vector.shape_cast %18 : vector<1x128x128xbf16> to vector<128x128xbf16>
    %c0_21 = arith.constant 0 : index
    %c0_22 = arith.constant 0 : index
    %c0_23 = arith.constant 0 : index
    %20 = vector.load %arg9[%c0_21, %c0_22, %c0_23] : memref<1x128x32xbf16, #tpu.memory_space<vmem>>, vector<1x128x32xbf16>
    %21 = vector.shape_cast %20 : vector<1x128x32xbf16> to vector<128x32xbf16>
    %cst_24 = arith.constant dense<0.000000e+00> : vector<128x32xf32>
    %22 = tpu.matmul %19, %21, %cst_24 {dimension_numbers = #tpu.dot_dimension_numbers<[1], [0], [0], [1], [0, 0, 1, 1], [], []>} : vector<128x128xbf16>, vector<128x32xbf16>, vector<128x32xf32> -> vector<128x32xf32>
    %c0_25 = arith.constant 0 : index
    %c0_26 = arith.constant 0 : index
    %c0_27 = arith.constant 0 : index
    %23 = vector.load %arg10[%c0_25, %c0_26, %c0_27] : memref<1x1x32xf32, #tpu.memory_space<vmem>>, vector<1x1x32xf32>
    %24 = vector.shape_cast %23 : vector<1x1x32xf32> to vector<1x32xf32>
    %25 = vector.broadcast %24 : vector<1x32xf32> to vector<128x32xf32>
    %26 = arith.addf %22, %25 : vector<128x32xf32>
    %27 = arith.truncf %8 : vector<128x32xf32> to vector<128x32xbf16>
    %28 = arith.truncf %17 : vector<128x32xf32> to vector<128x32xbf16>
    %cst_28 = arith.constant dense<0.000000e+00> : vector<128x128xf32>
    %29 = tpu.matmul %27, %28, %cst_28 {dimension_numbers = #tpu.dot_dimension_numbers<[1], [1], [0], [0], [0, 0, 1, 0], [], []>} : vector<128x32xbf16>, vector<128x32xbf16>, vector<128x128xf32> -> vector<128x128xf32>
    %c0_29 = arith.constant 0 : index
    %c0_30 = arith.constant 0 : index
    %c0_31 = arith.constant 0 : index
    %30 = vector.load %arg13[%c0_29, %c0_30, %c0_31] : memref<1x128x128xf32, #tpu.memory_space<vmem>>, vector<1x128x128xf32>
    %31 = vector.shape_cast %30 : vector<1x128x128xf32> to vector<128x128xf32>
    %32 = arith.addf %29, %31 : vector<128x128xf32>
    %cst_32 = arith.constant 0.176776692 : f32
    %33 = vector.broadcast %cst_32 : f32 to vector<128x128xf32>
    %34 = arith.mulf %32, %33 : vector<128x128xf32>
    %c0_33 = arith.constant 0 : index
    %c0_34 = arith.constant 0 : index
    %c0_35 = arith.constant 0 : index
    %c0_36 = arith.constant 0 : index
    %35 = vector.load %arg14[%c0_33, %c0_34, %c0_35, %c0_36] : memref<1x1x128x128xf32, #tpu.memory_space<vmem>>, vector<1x1x128x128xf32>
    %36 = vector.shape_cast %35 : vector<1x1x128x128xf32> to vector<128x128xf32>
    %cst_37 = arith.constant -1.000000e+09 : f32
    %37 = vector.broadcast %cst_37 : f32 to vector<128x128xf32>
    %38 = arith.mulf %36, %37 : vector<128x128xf32>
    %39 = arith.addf %34, %38 : vector<128x128xf32>
    %c0_38 = arith.constant 0 : index
    %c0_39 = arith.constant 0 : index
    %c0_40 = arith.constant 0 : index
    %40 = vector.load %arg15[%c0_38, %c0_39, %c0_40] : memref<1x128x128xf32, #tpu.memory_space<vmem>>, vector<1x128x128xf32>
    %41 = vector.shape_cast %40 : vector<1x128x128xf32> to vector<128x128xf32>
    %cst_41 = arith.constant -1.000000e+09 : f32
    %42 = vector.broadcast %cst_41 : f32 to vector<128x128xf32>
    %43 = arith.mulf %41, %42 : vector<128x128xf32>
    %44 = arith.addf %39, %43 : vector<128x128xf32>
    %c0_42 = arith.constant 0 : index
    %c0_43 = arith.constant 0 : index
    %c0_44 = arith.constant 0 : index
    %c0_45 = arith.constant 0 : index
    %45 = vector.load %arg17[%c0_42, %c0_43, %c0_44, %c0_45] : memref<1x1x128x128xf32, #tpu.memory_space<vmem>>, vector<1x1x128x128xf32>
    %46 = vector.shape_cast %45 : vector<1x1x128x128xf32> to vector<128x128xf32>
    %47 = vector.shape_cast %44 : vector<128x128xf32> to vector<1x1x128x128xf32>
    tpu.vector_store %arg17[%c0_42, %c0_43, %c0_44, %c0_45], %47 {strides = array<i32>} : memref<1x1x128x128xf32, #tpu.memory_space<vmem>>, vector<1x1x128x128xf32>,
    %cst_46 = arith.constant dense<0xFF800000> : vector<128xf32>
    %48 = vector.multi_reduction <maximumf>, %44, %cst_46 [1] : vector<128x128xf32> to vector<128xf32>
    %49 = vector.shape_cast %48 : vector<128xf32> to vector<128x1xf32>
    %50 = vector.broadcast %49 : vector<128x1xf32> to vector<128x128xf32>
    %51 = arith.subf %44, %50 : vector<128x128xf32>
    %52 = math.exp %51 : vector<128x128xf32>
    %cst_47 = arith.constant dense<0.000000e+00> : vector<128xf32>
    %53 = vector.multi_reduction <add>, %52, %cst_47 [1] : vector<128x128xf32> to vector<128xf32>
    %54 = vector.shape_cast %53 : vector<128xf32> to vector<128x1xf32>
    %55 = tpu.reciprocal %54 {approx = true} : vector<128x1xf32> -> vector<128x1xf32>
    %56 = vector.broadcast %55 : vector<128x1xf32> to vector<128x128xf32>
    %57 = arith.mulf %52, %56 : vector<128x128xf32>
    %58 = arith.truncf %57 : vector<128x128xf32> to vector<128x128xbf16>
    %59 = arith.truncf %26 : vector<128x32xf32> to vector<128x32xbf16>
    %cst_48 = arith.constant dense<0.000000e+00> : vector<128x32xf32>
    %60 = tpu.matmul %58, %59, %cst_48 {dimension_numbers = #tpu.dot_dimension_numbers<[1], [0], [0], [1], [0, 0, 1, 1], [], []>} : vector<128x128xbf16>, vector<128x32xbf16>, vector<128x32xf32> -> vector<128x32xf32>
    %61 = arith.truncf %60 : vector<128x32xf32> to vector<128x32xbf16>
    %c0_49 = arith.constant 0 : index
    %c0_50 = arith.constant 0 : index
    %c0_51 = arith.constant 0 : index
    %62 = vector.load %arg11[%c0_49, %c0_50, %c0_51] : memref<1x32x128xbf16, #tpu.memory_space<vmem>>, vector<1x32x128xbf16>
    %63 = vector.shape_cast %62 : vector<1x32x128xbf16> to vector<32x128xbf16>
    %cst_52 = arith.constant dense<0.000000e+00> : vector<128x128xf32>
    %64 = tpu.matmul %61, %63, %cst_52 {dimension_numbers = #tpu.dot_dimension_numbers<[1], [0], [0], [1], [0, 0, 1, 1], [], []>} : vector<128x32xbf16>, vector<32x128xbf16>, vector<128x128xf32> -> vector<128x128xf32>
    %c0_i32 = arith.constant 0 : i32
    %65 = arith.cmpi eq, %arg1, %c0_i32 : i32
    %66 = arith.extui %65 : i1 to i32
    %c0_i32_53 = arith.constant 0 : i32
    %67 = arith.cmpi ne, %66, %c0_i32_53 : i32
    scf.if %67 {
      %c0_56 = arith.constant 0 : index
      %c0_57 = arith.constant 0 : index
      %71 = vector.load %arg12[%c0_56, %c0_57] : memref<1x128xf32, #tpu.memory_space<vmem>>, vector<1x128xf32>
      %72 = vector.broadcast %71 : vector<1x128xf32> to vector<128x128xf32>
      %73 = arith.addf %64, %72 : vector<128x128xf32>
      %c0_58 = arith.constant 0 : index
      %c0_59 = arith.constant 0 : index
      %c0_60 = arith.constant 0 : index
      %74 = vector.load %arg16[%c0_58, %c0_59, %c0_60] : memref<1x128x128xf32, #tpu.memory_space<vmem>>, vector<1x128x128xf32>
      %75 = vector.shape_cast %74 : vector<1x128x128xf32> to vector<128x128xf32>
      %76 = vector.shape_cast %73 : vector<128x128xf32> to vector<1x128x128xf32>
      tpu.vector_store %arg16[%c0_58, %c0_59, %c0_60], %76 {strides = array<i32>} : memref<1x128x128xf32, #tpu.memory_space<vmem>>, vector<1x128x128xf32>,
    } else {
    }
    %c0_i32_54 = arith.constant 0 : i32
    %68 = arith.cmpi sgt, %arg1, %c0_i32_54 : i32
    %69 = arith.extui %68 : i1 to i32
    %c0_i32_55 = arith.constant 0 : i32
    %70 = arith.cmpi ne, %69, %c0_i32_55 : i32
    scf.if %70 {
      %c0_56 = arith.constant 0 : index
      %c0_57 = arith.constant 0 : index
      %c0_58 = arith.constant 0 : index
      %71 = vector.load %arg16[%c0_56, %c0_57, %c0_58] : memref<1x128x128xf32, #tpu.memory_space<vmem>>, vector<1x128x128xf32>
      %72 = vector.shape_cast %71 : vector<1x128x128xf32> to vector<128x128xf32>
      %73 = arith.addf %72, %64 : vector<128x128xf32>
      %c0_59 = arith.constant 0 : index
      %c0_60 = arith.constant 0 : index
      %c0_61 = arith.constant 0 : index
      %74 = vector.load %arg16[%c0_59, %c0_60, %c0_61] : memref<1x128x128xf32, #tpu.memory_space<vmem>>, vector<1x128x128xf32>
      %75 = vector.shape_cast %74 : vector<1x128x128xf32> to vector<128x128xf32>
      %76 = vector.shape_cast %73 : vector<128x128xf32> to vector<1x128x128xf32>
      tpu.vector_store %arg16[%c0_59, %c0_60, %c0_61], %76 {strides = array<i32>} : memref<1x128x128xf32, #tpu.memory_space<vmem>>, vector<1x128x128xf32>,
    } else {
    }
    return
  }
  func.func @transform_0(%arg0: i32, %arg1: i32) -> (i32, i32, i32) {
    %c0_i32 = arith.constant 0 : i32
    %c0_i32_0 = arith.constant 0 : i32
    %c0_i32_1 = arith.constant 0 : i32
    return %arg0, %c0_i32, %c0_i32_0 : i32, i32, i32
  }
  func.func @transform_1(%arg0: i32, %arg1: i32) -> (i32, i32, i32) {
    %c0_i32 = arith.constant 0 : i32
    %c0_i32_0 = arith.constant 0 : i32
    %c0_i32_1 = arith.constant 0 : i32
    return %arg0, %c0_i32, %c0_i32_0 : i32, i32, i32
  }
  func.func @transform_2(%arg0: i32, %arg1: i32) -> (i32, i32, i32) {
    %c0_i32 = arith.constant 0 : i32
    %c0_i32_0 = arith.constant 0 : i32
    %c0_i32_1 = arith.constant 0 : i32
    return %arg0, %c0_i32, %c0_i32_0 : i32, i32, i32
  }
  func.func @transform_3(%arg0: i32, %arg1: i32) -> (i32, i32, i32) {
    %c0_i32 = arith.constant 0 : i32
    %c0_i32_0 = arith.constant 0 : i32
    %c0_i32_1 = arith.constant 0 : i32
    return %arg1, %c0_i32, %c0_i32_0 : i32, i32, i32
  }
  func.func @transform_4(%arg0: i32, %arg1: i32) -> (i32, i32, i32) {
    %c0_i32 = arith.constant 0 : i32
    %c0_i32_0 = arith.constant 0 : i32
    %c0_i32_1 = arith.constant 0 : i32
    return %arg1, %c0_i32, %c0_i32_0 : i32, i32, i32
  }
  func.func @transform_5(%arg0: i32, %arg1: i32) -> (i32, i32, i32) {
    %c0_i32 = arith.constant 0 : i32
    %c0_i32_0 = arith.constant 0 : i32
    %c0_i32_1 = arith.constant 0 : i32
    return %arg1, %c0_i32, %c0_i32_0 : i32, i32, i32
  }
  func.func @transform_6(%arg0: i32, %arg1: i32) -> (i32, i32, i32) {
    %c0_i32 = arith.constant 0 : i32
    %c0_i32_0 = arith.constant 0 : i32
    %c0_i32_1 = arith.constant 0 : i32
    return %arg1, %c0_i32, %c0_i32_0 : i32, i32, i32
  }
  func.func @transform_7(%arg0: i32, %arg1: i32) -> (i32, i32, i32) {
    %c0_i32 = arith.constant 0 : i32
    %c0_i32_0 = arith.constant 0 : i32
    %c0_i32_1 = arith.constant 0 : i32
    return %arg1, %c0_i32, %c0_i32_0 : i32, i32, i32
  }
  func.func @transform_8(%arg0: i32, %arg1: i32) -> (i32, i32, i32) {
    %c0_i32 = arith.constant 0 : i32
    %c0_i32_0 = arith.constant 0 : i32
    %c0_i32_1 = arith.constant 0 : i32
    return %arg1, %c0_i32, %c0_i32_0 : i32, i32, i32
  }
  func.func @transform_9(%arg0: i32, %arg1: i32) -> (i32, i32, i32) {
    %c0_i32 = arith.constant 0 : i32
    %c0_i32_0 = arith.constant 0 : i32
    %c0_i32_1 = arith.constant 0 : i32
    return %arg1, %c0_i32, %c0_i32_0 : i32, i32, i32
  }
  func.func @transform_10(%arg0: i32, %arg1: i32) -> (i32, i32) {
    %c0_i32 = arith.constant 0 : i32
    %c0_i32_0 = arith.constant 0 : i32
    %c0_i32_1 = arith.constant 0 : i32
    return %c0_i32, %c0_i32_0 : i32, i32
  }
  func.func @transform_11(%arg0: i32, %arg1: i32) -> (i32, i32, i32) {
    %c0_i32 = arith.constant 0 : i32
    %c0_i32_0 = arith.constant 0 : i32
    %c0_i32_1 = arith.constant 0 : i32
    return %arg1, %c0_i32, %c0_i32_0 : i32, i32, i32
  }
  func.func @transform_12(%arg0: i32, %arg1: i32) -> (i32, i32, i32, i32) {
    %c0_i32 = arith.constant 0 : i32
    %c0_i32_0 = arith.constant 0 : i32
    %c0_i32_1 = arith.constant 0 : i32
    %c0_i32_2 = arith.constant 0 : i32
    return %arg0, %c0_i32, %c0_i32_0, %c0_i32_1 : i32, i32, i32, i32
  }
  func.func @transform_13(%arg0: i32, %arg1: i32) -> (i32, i32, i32) {
    %c0_i32 = arith.constant 0 : i32
    %c0_i32_0 = arith.constant 0 : i32
    %c0_i32_1 = arith.constant 0 : i32
    %c0_i32_2 = arith.constant 0 : i32
    return %c0_i32, %c0_i32_0, %c0_i32_1 : i32, i32, i32
  }
  func.func @transform_14(%arg0: i32, %arg1: i32) -> (i32, i32, i32) {
    %c0_i32 = arith.constant 0 : i32
    %c0_i32_0 = arith.constant 0 : i32
    %c0_i32_1 = arith.constant 0 : i32
    return %arg0, %c0_i32, %c0_i32_0 : i32, i32, i32
  }
  func.func @transform_15(%arg0: i32, %arg1: i32) -> (i32, i32, i32, i32) {
    %c0_i32 = arith.constant 0 : i32
    %c0_i32_0 = arith.constant 0 : i32
    %c0_i32_1 = arith.constant 0 : i32
    return %arg0, %arg1, %c0_i32, %c0_i32_0 : i32, i32, i32, i32
  }
}

</mosaic_0001>

<bundles_post_ra>
// kernel: tpu_custom_call.1
= control target key start
LH: loop header
LB: loop body
LE: loop exit
PB: predicated region body
PF: predicated region fallthrough
CT: control target
= control target key end

     0   :  { %s4675_s0 = inlined_call_operand.vmem [shape: bf16[2,128,128], index: 0, kind: input, shape index: {}]   ;;  %s4676_s1 = inlined_call_operand.hbm [shape: bf16[2,128,128], index: 1, kind: input, shape index: {}]   ;;  %s4677_s2 = inlined_call_operand.hbm [shape: bf16[2,128,128], index: 2, kind: input, shape index: {}]   ;;  %s4678_s3 = inlined_call_operand.vmem [shape: bf16[4,128,32], index: 3, kind: input, shape index: {}]   ;;  %s4679_s4 = inlined_call_operand.vmem [shape: f32[4,1,32], index: 4, kind: input, shape index: {}]   ;;  %s4680_s5 = inlined_call_operand.vmem [shape: bf16[4,128,32], index: 5, kind: input, shape index: {}]   ;;  %s4681_s6 = inlined_call_operand.vmem [shape: f32[4,1,32], index: 6, kind: input, shape index: {}]   ;;  %s4682_s7 = inlined_call_operand.vmem [shape: bf16[4,128,32], index: 7, kind: input, shape index: {}]   ;;  %s4683_s8 = inlined_call_operand.vmem [shape: f32[4,1,32], index: 8, kind: input, shape index: {}]   ;;  %s4684_s9 = inlined_call_operand.hbm [shape: bf16[4,32,128], index: 9, kind: input, shape index: {}]   ;;  %s4685_s10 = inlined_call_operand.vmem [shape: f32[1,128], index: 10, kind: input, shape index: {}]   ;;  %s4686_s11 = inlined_call_operand.vmem [shape: f32[4,128,128], index: 11, kind: input, shape index: {}]   ;;  %s4687_s12 = inlined_call_operand.vmem [shape: f32[2,1,128,128], index: 12, kind: input, shape index: {}]   ;;  %s4688_s13 = inlined_call_operand.hbm [shape: f32[1,128,128], index: 13, kind: input, shape index: {}]   ;;  %s4689_s14 = inlined_call_operand.hbm [shape: f32[2,128,128], index: 14, kind: output, shape index: {0}]   ;;  %s4690_s15 = inlined_call_operand.hbm [shape: f32[2,4,128,128], index: 15, kind: output, shape index: {1}]  }
   0x1   :  { %4733 = sst [smem:[#allocation34_spill]] %s4675_s0 }
   0x2   :  { %4734 = sst [smem:[#allocation35_spill]] %s4676_s1 }
   0x3   :  { %4735 = sst [smem:[#allocation36_spill]] %s4677_s2 }
   0x4   :  { %4736 = sst [smem:[#allocation37_spill]] %s4678_s3 }
   0x5   :  { %4737 = sst [smem:[#allocation38_spill]] %s4679_s4 }
   0x6   :  { %4738 = sst [smem:[#allocation39_spill]] %s4680_s5 }
   0x7   :  { %4739 = sst [smem:[#allocation40_spill]] %s4681_s6 }
   0x8   :  { %4740 = sst [smem:[#allocation41_spill]] %s4682_s7 }
   0x9   :  { %4741 = sst [smem:[#allocation42_spill]] %s4683_s8 }
   0xa   :  { %4742 = sst [smem:[#allocation43_spill]] %s4684_s9 }
   0xb   :  { %4743 = sst [smem:[#allocation44_spill]] %s4685_s10 }
   0xc   :  { %4744 = sst [smem:[#allocation45_spill]] %s4686_s11 }
   0xd   :  { %4745 = sst [smem:[#allocation46_spill]] %s4687_s12 }
   0xe   :  { %4746 = sst [smem:[#allocation47_spill]] %s4688_s13 }
   0xf   :  { %4747 = sst [smem:[#allocation48_spill]] %s4689_s14 }
  0x10   :  { %4748 = sst [smem:[#allocation49_spill]] %s4690_s15 }
  0x11   :  { %21 = vsyncpa [#allocation3], 0 }
  0x12   :  { %23 = vsyncpa [#allocation3 + $0x1], 0 }
  0x13   :  { %24 = vsyncpa [#allocation6], 0 }
  0x14   :  { %26 = vsyncpa [#allocation6 + $0x1], 0 }
  0x15   :  { %27 = vsyncpa [#allocation9], 0 }
  0x16   :  { %28 = vsyncpa [#allocation4], 0 }
  0x17   :  { %30 = vsyncpa [#allocation4 + $0x1], 0 }
  0x18   :  { %31 = vsyncpa [#allocation12], 0 }
  0x19   :  { %33 = vsyncpa [#allocation12 + $0x1], 0  ;;  %s3692_s18 = smov 0   ;;  %s3694_s19 = smov 0  }
  0x1a   :  { %s3696_s20 = smov 0   ;;  %s3698_s21 = smov 0  }
  0x1b   :  { %s3700_s22 = smov 0   ;;  %s3702_s23 = smov 0  }
  0x1c   :  { %s3704_s24 = smov 0   ;;  %s3706_s25 = smov 0  }
  0x1d   :  { %s3708_s26 = smov 0   ;;  %s3710_s27 = smov 0  }
  0x1e   :  { %s3712_s28 = smov 0   ;;  %s3714_s29 = smov 0  }
  0x1f   :  { %s3716_s30 = smov 0   ;;  %s3718_s16 = smov 0  }
  0x20 LB: > { %4749 = sst [smem:[#allocation19_spill]] %s3546_s18  ;;  %p91_p0 = scmp.ne.s32.totalorder %s3578_s26, %s3574_s25  ;;  %s3598_s16 = sphi %s3718_s16, %s39_s16   ;;  %s3594_s30 = sphi %s3716_s30, %s4847_s30   ;;  %s3590_s29 = sphi %s3714_s29, %s4846_s29   ;;  %s3586_s28 = sphi %s3712_s28, %s4845_s28   ;;  %s3582_s27 = sphi %s3710_s27, %s4832_s27   ;;  %s3578_s26 = sphi %s3708_s26, %s4844_s26   ;;  %s3574_s25 = sphi %s3706_s25, %s4843_s25   ;;  %s3570_s24 = sphi %s3704_s24, %s4842_s24   ;;  %s3566_s23 = sphi %s3702_s23, %s4841_s23   ;;  %s3562_s22 = sphi %s3700_s22, %s4840_s22   ;;  %s3558_s21 = sphi %s3698_s21, %s4839_s21   ;;  %s3554_s20 = sphi %s3696_s20, %s4838_s20   ;;  %s3550_s19 = sphi %s3694_s19, %s4837_s19   ;;  %s3546_s18 = sphi %s3692_s18, %s4830_s18  }
  0x21   : > { %4750 = sst [smem:[#allocation20_spill]] %s3550_s19  ;;  %p4696_p1 = scmp.eq.s32.totalorder %s3598_s16, 0 }
  0x22   : > { %4751 = sst [smem:[#allocation21_spill]] %s3570_s24  ;;  %p4695_p2 = scmp.lt.s32.totalorder %s3598_s16, 8 }
  0x23   : > { %4752 = sst [smem:[#allocation22_spill]] %s3582_s27  ;;  %p93_p3 = por %p4696_p1, %p91_p0 }
  0x24   : > { %4753 = sst [smem:[#allocation23_spill]] %s3586_s28  ;;  %s4693_s14 = sand.u32 1, %s3578_s26  }
  0x25   : > { %4754 = sst [smem:[#allocation24_spill]] %s3590_s29  ;;  %s3776_s10 = sshll.u32 %s4693_s14, 6 }
  0x26   : > { %4755 = sst [smem:[#allocation25_spill]] %s3594_s30  ;;  %s4694_s8 = sshll.u32 %s3594_s30, 10 }
  0x27   : > { %p3781_p4 = pnand %p4695_p2, %p93_p3  ;;  %s522_s15 = sand.u32 1, %s3598_s16  }
  0x28   : > { %s4757_s2 = sld [smem:[#allocation36_spill]]  ;;  %s526_s14 = scalar_lea.vmem [#allocation5], %s3776_s10 }
  0x29   : > { %s4756_s11 = scalar_select %p3781_p4, 1, 0 }
  0x2a   : > { %s533_s4 = sshll.u32 %s526_s14, 4  ;;  %s3796_s6 = scalar_lea.sflag [#allocation6], %s522_s15  ;;  %s3794_s4 = int_to_ptr.vmem [resolvable:$true] %s533_s4 }
  0x2b   : > { %p4697_p6 = pneg %p3781_p4 }
  0x2e   : > { %s3791_s7 = scalar_lea.hbm %s4757_s2, %s4694_s8  ;;  %s3295_s8 = scalar_lea.hbm %s4757_s2, 2048 }
  0x2f   : > { %s3290_s0 = scalar_lea.hbm %s3791_s7, 1024  ;;  %p3296_p9 = scmp.lt.u32.totalorder %s3791_s7, %s4757_s2 }
  0x30   : > { %p3291_p5 = scmp.ne.s32.totalorder %s3791_s7, %s3290_s0  ;;  %p3297_p10 = scmp.lt.u32.totalorder %s3295_s8, %s3290_s0 }
  0x31   : > { %p3299_p12 = scmp.lt.u32.totalorder %s3290_s0, %s3791_s7 }
  0x32   : > { %p3293_p7 = pnand %p4697_p6, %p3291_p5  ;;  %p3298_p11 = por %p3297_p10, %p3296_p9 }
  0x34   : > { %p3294_p8 = pneg %p3293_p7  ;;  %p3300_p13 = por %p3299_p12, %p3298_p11 }
  0x36   : > { %p3301_p3 = pnand %p3300_p13, %p3294_p8 }
  0x38   : > { %3304 = shalt.err (!%p3301_p3)
}
  0x39   : > { %s3305_s14 = scalar_lea.vmem %s3794_s4, 1024  ;;  %s3600_s15 = smov [#allocation5]  }
  0x3a   : > { %p3306_p5 = scmp.ne.s32.totalorder %s3794_s4, %s3305_s14  ;;  %s3310_s12 = sshll.u32 %s3600_s15, 4  ;;  %s3311_s12 = int_to_ptr.vmem [resolvable:$false] %s3310_s12 }
  0x3b   : > { %s3312_s3 = scalar_lea.vmem %s3311_s12, 2048  ;;  %p3313_p1 = scmp.lt.s32.totalorder %s3794_s4, %s3311_s12 }
  0x3c   : > { %p3308_p7 = pnand %p3306_p5, %p4697_p6  ;;  %p3314_p9 = scmp.lt.s32.totalorder %s3312_s3, %s3305_s14 }
  0x3e   : > { %p3309_p2 = pneg %p3308_p7  ;;  %p3315_p10 = por %p3314_p9, %p3313_p1 }
  0x40   : > { %p3316_p11 = pnand %p3315_p10, %p3309_p2 }
  0x42   : > { %3319 = shalt.err (!%p3316_p11)
}
  0x43   : > { %s4700_s0 = smov 64   ;;  %s4702_s5 = smov 4  }
  0x44   : > { %3042 = dma.hbm_to_vmem [thread:$0]  (!%p3781_p4), %s3791_s7, 1024, %s3794_s4, %s3796_s6, %s4700_s0, %s4700_s0, %s4702_s5  }
  0x45   : > { %s3828_s8 = sadd.s32 4294967295, %s3598_s16   ;;  %s2601_s17 = sadd.s32 4294967294, %s3598_s16  }
  0x46   : > { %4758 = sst [smem:[#allocation26_spill]] %s3828_s8  ;;  %p97_p1 = scmp.ne.s32.totalorder %s3574_s25, %s3570_s24 }
  0x47   : > { %p4699_p2 = scmp.eq.s32.totalorder %s3828_s8, 0  ;;  %p305_p8 = scmp.ne.s32.totalorder %s3562_s22, %s3558_s21 }
  0x48   : > { %p423_p12 = scmp.eq.s32.totalorder %s3828_s8, 7  ;;  %p429_p3 = scmp.eq.s32.totalorder %s2601_s17, 7 }
  0x49   : > { %p3839_p13 = por %p4699_p2, %p97_p1  ;;  %p3845_p5 = por %p305_p8, %p4699_p2 }
  0x4a   : > { %p3852_p7 = por %p423_p12, %p91_p0  ;;  %p3856_p9 = por %p429_p3, %p97_p1 }
  0x4b   : > { %s4759_s14 = scalar_select %p3839_p13, 1, 0 }
  0x4c   : > { %s4760_s4 = scalar_select %p3845_p5, 1, 0 }
  0x4d   : > { %s4762_s7 = scalar_select %p3852_p7, 1, 0 }
  0x4e   : > { %4761 = sst [smem:[#allocation27_spill]] %s4760_s4  ;;  %p450_p10 = scmp.ne.s32.totalorder %s3554_s20, %s3550_s19 }
  0x4f   : > { %4763 = sst [smem:[#allocation28_spill]] %s4762_s7  ;;  %p456_p11 = scmp.ne.s32.totalorder %s3550_s19, %s3546_s18 }
  0x50   : > { %s4764_s21 = scalar_select %p3856_p9, 1, 0 }
  0x51   : > { %p2602_p6 = scmp.ge.s32.totalorder %s3598_s16, 1  ;;  %p3865_p13 = por %p450_p10, %p423_p12 }
  0x52   : > { %4765 = sst [smem:[#allocation29_spill]] %s4764_s21  ;;  %p464_p8 = scmp.lt.s32.totalorder %s3598_s16, 9 }
  0x53   : > { %s4766_s15 = scalar_select %p3865_p13, 1, 0 }
  0x54   : > { %p3870_p2 = por %p456_p11, %p429_p3  ;;  %p3874_p0 = pnand %p2602_p6, %p464_p8 }
  0x55   : > { %4767 = sst [smem:[#allocation30_spill]] %s4766_s15  ;;  %s3603_s17 = smov [#allocation8]  }
  0x56   : > { %s4768_s12 = scalar_select %p3870_p2, 1, 0 }
  0x57   : > { %s4770_s3 = scalar_select %p3874_p0, 1, 0 }
  0x58   : > { %4769 = sst [smem:[#allocation31_spill]] %s4768_s12  ;;  %s479_s0 = sshll.u32 %s3603_s17, 4  ;;  %s480_s0 = int_to_ptr.vmem [resolvable:$true] %s479_s0 }
  0x59   : > { %p3032_p1 = pneg %p3874_p0  ;;  %p4771_p9 = scmp.eq.s32.totalorder %s3828_s8, 0 }
  0x5a   : > { %s4773_s2 = sshll.u32 %s3594_s30, 10  ;;  %s4774_s1 = sld [smem:[#allocation35_spill]] }
  0x5b   : > { %p3882_p12 = pnand %p3032_p1, %p4771_p9  ;;  %s505_s24 = scalar_lea.vmem [#allocation2], %s3776_s10 }
  0x5c   : > { %s512_s15 = sshll.u32 %s505_s24, 4  ;;  %s4775_s13 = sld [smem:[#allocation47_spill]]  ;;  %s3894_s15 = int_to_ptr.vmem [resolvable:$true] %s512_s15 }
  0x5d   : > { %p3322_p3 = pneg %p3882_p12 }
  0x60   : > { %s3891_s12 = scalar_lea.hbm %s4774_s1, %s4773_s2 }
  0x62   : > { %s3320_s19 = scalar_lea.hbm %s4775_s13, 2048 }
  0x63   : > { %p3321_p6 = scmp.ne.s32.totalorder %s4775_s13, %s3320_s19  ;;  %p3327_p11 = scmp.lt.u32.totalorder %s3320_s19, %s4775_s13 }
  0x65   : > { %p3323_p9 = pnand %p3322_p3, %p3321_p6 }
  0x67   : > { %p3324_p10 = pneg %p3323_p9 }
  0x69   : > { %p3329_p8 = pnand %p3327_p11, %p3324_p10 }
  0x6b   : > { %3332 = shalt.err (!%p3329_p8)
}
  0x6c   : > { %s3333_s2 = scalar_lea.vmem %s480_s0, 2048  ;;  %p3341_p7 = scmp.lt.s32.totalorder %s480_s0, %s480_s0 }
  0x6d   : > { %p3334_p1 = scmp.ne.s32.totalorder %s480_s0, %s3333_s2  ;;  %p3342_p5 = scmp.lt.s32.totalorder %s3333_s2, %s3333_s2 }
  0x6f   : > { %p3336_p2 = pnand %p3334_p1, %p3322_p3  ;;  %p3343_p0 = por %p3342_p5, %p3341_p7 }
  0x71   : > { %p3337_p13 = pneg %p3336_p2 }
  0x73   : > { %p3344_p4 = pnand %p3343_p0, %p3337_p13 }
  0x75   : > { %3347 = shalt.err (!%p3344_p4)
}
  0x76   : > { %s3604_s10 = smov 128   ;;  %s3605_s19 = smov 8  }
  0x77   : > { %3035 = dma.hbm_to_vmem [thread:$0]  (!%p3882_p12), %s4775_s13, 2048, %s480_s0, [#allocation9], %s3604_s10, %s3604_s10, %s3605_s19  }
  0x78   : > { %s4776_s28 = sand.u32 1, %s3578_s26   ;;  %s3348_s17 = scalar_lea.hbm %s3891_s12, 1024 }
  0x79   : > { %s3914_s7 = scalar_lea.sflag [#allocation3], %s4776_s28  ;;  %p3349_p2 = scmp.ne.s32.totalorder %s3891_s12, %s3348_s17 }
  0x7a   : > { %p4777_p4 = scmp.ne.s32.totalorder %s4756_s11, 0  ;;  %s3353_s2 = scalar_lea.hbm %s4774_s1, 2048 }
  0x7b   : > { %p3354_p0 = scmp.lt.u32.totalorder %s3891_s12, %s4774_s1  ;;  %p3355_p6 = scmp.lt.u32.totalorder %s3353_s2, %s3348_s17 }
  0x7c   : > { %p4778_p13 = pneg %p4777_p4  ;;  %p3357_p12 = scmp.lt.u32.totalorder %s3348_s17, %s3891_s12 }
  0x7d   : > { %p3356_p3 = por %p3355_p6, %p3354_p0 }
  0x7e   : > { %p3351_p5 = pnand %p3349_p2, %p4778_p13 }
  0x7f   : > { %p3358_p9 = por %p3357_p12, %p3356_p3 }
  0x80   : > { %p3352_p7 = pneg %p3351_p5 }
  0x82   : > { %p3359_p10 = pnand %p3358_p9, %p3352_p7 }
  0x84   : > { %3362 = shalt.err (!%p3359_p10)
}
  0x85   : > { %s3363_s0 = scalar_lea.vmem %s3894_s15, 1024  ;;  %p4779_p8 = pmov %p4778_p13 }
  0x86   : > { %p3364_p11 = scmp.ne.s32.totalorder %s3894_s15, %s3363_s0  ;;  %s3606_s5 = smov [#allocation2]  }
  0x87   : > { %s3368_s10 = sshll.u32 %s3606_s5, 4  ;;  %s3369_s10 = int_to_ptr.vmem [resolvable:$false] %s3368_s10 }
  0x88   : > { %p3366_p1 = pnand %p3364_p11, %p4779_p8  ;;  %s3370_s8 = scalar_lea.vmem %s3369_s10, 2048 }
  0x89   : > { %p3371_p13 = scmp.lt.s32.totalorder %s3894_s15, %s3369_s10  ;;  %p3372_p5 = scmp.lt.s32.totalorder %s3370_s8, %s3363_s0 }
  0x8a   : > { %p3367_p2 = pneg %p3366_p1 }
  0x8b   : > { %p3373_p0 = por %p3372_p5, %p3371_p13 }
  0x8d   : > { %p3374_p6 = pnand %p3373_p0, %p3367_p2 }
  0x8f   : > { %3377 = shalt.err (!%p3374_p6)
}
  0x90   : > { %s4780_s4 = smov 4   ;;  %s4781_s19 = smov 64  }
  0x91   : > { %3039 = dma.hbm_to_vmem [thread:$0]  (!%p4777_p4), %s3891_s12, 1024, %s3894_s15, %s3914_s7, %s4781_s19, %s4781_s19, %s4780_s4  }
  0x92   : > { %s48_s11 = sadd.s32 1, %s3590_s29  ;;  %s292_s24 = sadd.s32 1, %s3566_s23 }
  0x93   : > { %p49_p7 = scmp.ge.s32.totalorder %s48_s11, 4  ;;  %p299_p3 = scmp.ne.s32.totalorder %s3566_s23, %s3562_s22 }
  0x94   : > { %s440_s27 = sadd.s32 1, %s3554_s20  ;;  %s587_s28 = sand.u32 1, %s3566_s23  }
  0x95   : > { %s4849_s11 = smov (%p49_p7, %s48_s11), 0  ;;  %s4783_s17 = sadd.s32 1, %s3594_s30 }
  0x96   : > { %4782 = sst [smem:[#allocation32_spill]] %s4849_s11  ;;  %s4851_s17 = smov (!%p49_p7, %s4783_s17), %s3594_s30 }
  0x97   : > { %s289_s18 = ssub.s32 %s3590_s29, %s4849_s11  ;;  %p4784_p12 = scmp.eq.s32.totalorder %s3598_s16, 0 }
  0x98   : > { %p53_p4 = scmp.ge.s32.totalorder %s4851_s17, 2  ;;  %p290_p10 = scmp.eq.s32.totalorder %s289_s18, 0 }
  0x99   : > { %p3958_p9 = por %p299_p3, %p4784_p12  ;;  %s2611_s12 = sshll.u32 %s587_s28, 4 }
  0x9a   : > { %s2716_s7 = sshll.u32 %s3590_s29, 8  ;;  %s4853_s17 = smov (%p53_p4, %s4851_s17), 0 }
  0x9b   : > { %4786 = sst [smem:[#allocation33_spill]] %s4853_s17  ;;  %s81_s2 = ssub.s32 %s3594_s30, %s4853_s17 }
  0x9c   : > { %s3966_s21 = scalar_select %p290_p10, %s3566_s23, %s292_s24  }
  0x9d   : > { %p82_p11 = scmp.eq.s32.totalorder %s81_s2, 0  ;;  %s437_s0 = sor.u32 %s289_s18, %s81_s2 }
  0x9e   : > { %p438_p8 = scmp.eq.s32.totalorder %s437_s0, 0  ;;  %s4787_s9 = sld [smem:[#allocation43_spill]] }
  0x9f   : > { %s4788_s1 = sadd.s32 1, %s3578_s26  ;;  %s589_s24 = scalar_lea.vmem [#allocation7], %s2611_s12 }
  0xa0   : > { %s3978_s28 = scalar_select %p82_p11, %s3578_s26, %s4788_s1  }
  0xa1   : > { %s3981_s13 = scalar_select %p438_p8, %s3554_s20, %s440_s27  }
  0xa2   : > { %s596_s11 = sshll.u32 %s589_s24, 4  ;;  %p4789_p1 = scmp.lt.s32.totalorder %s3598_s16, 8  ;;  %s3991_s11 = int_to_ptr.vmem [resolvable:$true] %s596_s11 }
  0xa4   : > { %s3973_s8 = scalar_lea.hbm %s4787_s9, %s2716_s7  ;;  %p3987_p2 = pnand %p4789_p1, %p3958_p9 }
  0xa5   : > { %s3378_s7 = scalar_lea.hbm %s3973_s8, 256  ;;  %s3383_s15 = scalar_lea.hbm %s4787_s9, 1024 }
  0xa6   : > { %p3379_p13 = scmp.ne.s32.totalorder %s3973_s8, %s3378_s7  ;;  %p3380_p5 = pneg %p3987_p2 }
  0xa7   : > { %p3384_p7 = scmp.lt.u32.totalorder %s3973_s8, %s4787_s9  ;;  %p3385_p3 = scmp.lt.u32.totalorder %s3383_s15, %s3378_s7 }
  0xa8   : > { %p3381_p0 = pnand %p3380_p5, %p3379_p13  ;;  %p3387_p9 = scmp.lt.u32.totalorder %s3378_s7, %s3973_s8 }
  0xa9   : > { %p3386_p12 = por %p3385_p3, %p3384_p7 }
  0xaa   : > { %p3382_p6 = pneg %p3381_p0 }
  0xab   : > { %p3388_p4 = por %p3387_p9, %p3386_p12 }
  0xad   : > { %p3389_p10 = pnand %p3388_p4, %p3382_p6 }
  0xaf   : > { %3392 = shalt.err (!%p3389_p10)
}
  0xb0   : > { %s3393_s0 = scalar_lea.vmem %s3991_s11, 256  ;;  %s3607_s5 = smov [#allocation7]  }
  0xb1   : > { %p3394_p11 = scmp.ne.s32.totalorder %s3991_s11, %s3393_s0  ;;  %s3398_s10 = sshll.u32 %s3607_s5, 4  ;;  %s3399_s10 = int_to_ptr.vmem [resolvable:$false] %s3398_s10 }
  0xb2   : > { %s3400_s24 = scalar_lea.vmem %s3399_s10, 512  ;;  %p3401_p13 = scmp.lt.s32.totalorder %s3991_s11, %s3399_s10 }
  0xb3   : > { %p3396_p8 = pnand %p3394_p11, %p3380_p5  ;;  %p3402_p0 = scmp.lt.s32.totalorder %s3400_s24, %s3393_s0 }
  0xb5   : > { %p3397_p1 = pneg %p3396_p8  ;;  %p3403_p7 = por %p3402_p0, %p3401_p13 }
  0xb7   : > { %p3404_p3 = pnand %p3403_p7, %p3397_p1 }
  0xb9   : > { %3407 = shalt.err (!%p3404_p3)
}
  0xba   : > { %3045 = dma.hbm_to_vmem [thread:$0]  (!%p3987_p2), %s3973_s8, 256, %s3991_s11, %s3796_s6, %s4781_s19, %s4781_s19, %s4780_s4  }
  0xbb   : > { %p4791_p5 = scmp.ne.s32.totalorder %s4770_s3, 0 }
  0xbc   : > { %s4025_s7 = sand.u32 (!%p4791_p5), 1, %s3574_s25   ;;  %p4792_p6 = scmp.ne.s32.totalorder (!%p4791_p5), %s4759_s14, 0 }
  0xbd   : > { %624 = sbr.rel (%p4791_p5) target bundleno = 1624 (0x658), region = 76  ;;  %s2615_s1 = sshll.u32 (!%p4791_p5), %s4025_s7, 6 }
  0xbe   : > { %s627_s27 = scalar_lea.sflag (!%p4791_p5), [#allocation3], %s4025_s7  ;;  %s4029_s15 = scalar_lea.vmem (!%p4791_p5), [#allocation2], %s2615_s1 }
  0xc4   : > { %3521 = dma.done.wait (%p4792_p6), %s627_s27, 1024  }
  0xc5   : > { %3523 = vsyncadd (%p4792_p6), %s627_s27, 4294966272  ;;  %s4793_s18 = sld [smem:[#allocation26_spill]]  ;;  %s4036_s4 = scalar_lea.vmem [#allocation5], %s2615_s1 }
  0xcb   : > { %s635_s6 = sand.u32 1, %s4793_s18  }
  0xcc   : > { %s636_s3 = scalar_lea.sflag [#allocation6], %s635_s6 }
  0xcd   : > { %3525 = dma.done.wait (%p4792_p6), %s636_s3, 1024  }
  0xce   : > { %3527 = vsyncadd (%p4792_p6), %s636_s3, 4294966272  ;;  %s4794_s19 = sld [smem:[#allocation27_spill]]  ;;  %s646_s11 = sand.u32 1, %s3562_s22  }
  0xcf   : > { %s4043_s8 = sshll.u32 %s646_s11, 4 }
  0xd0   : > { %s648_s12 = scalar_lea.vmem [#allocation7], %s4043_s8 }
  0xd4   : > { %p4795_p2 = scmp.ne.s32.totalorder %s4794_s19, 0 }
  0xd6   : > { %3529 = dma.done.wait (%p4795_p2), %s636_s3, 256  }
  0xd7   : > { %3531 = vsyncadd (%p4795_p2), %s636_s3, 4294967040  ;;  %p4796_p12 = scmp.eq.s32.totalorder %s4793_s18, 0 }
  0xd9   : > { %3533 = dma.done.wait (%p4796_p12), [#allocation9], 2048   ;;  %p4797_p9 = pmov %p4796_p12 }
  0xda   : > { %s4798_s14 = sld [smem:[#allocation22_spill]]  ;;  %s4799_s0 = sld [smem:[#allocation23_spill]]  ;;  %v3184_v4 = vld [vmem:[%s4029_s15] sm:$0xff]   ;;  %v3185_v16 = vld [vmem:[%s4029_s15 + $0x8] sm:$0xff]   ;;  %v3186_v17 = vld [vmem:[%s4029_s15 + $0x10] sm:$0xff]   ;;  %vm1521_vm0 = vcmask 261120  }
  0xdb   : > { %3535 = vsyncadd (%p4797_p9), [#allocation9], 4294965248  ;;  %s4800_s27 = sld [smem:[#allocation39_spill]]  ;;  %s4801_s19 = sld [smem:[#allocation37_spill]]  ;;  %2862 = vmatprep.mubr.bf16.mxu1 %v3184_v4  ;;  %v3187_v20 = vld [vmem:[%s4029_s15 + $0x18] sm:$0xff]   ;;  %v3189_v21 = vld [vmem:[%s4029_s15 + $0x20] sm:$0xff]  }
  0xdc   : > { %s4802_s18 = sld [smem:[#allocation34_spill]]  ;;  %v3190_v24 = vld [vmem:[%s4029_s15 + $0x28] sm:$0xff]   ;;  %v3195_v25 = vld [vmem:[%s4029_s15 + $0x30] sm:$0xff]   ;;  %v3196_v28 = vld [vmem:[%s4029_s15 + $0x38] sm:$0xff]   ;;  %s4810_s8 = sshll.u32 %s4025_s7, 7 }
  0xe0   : > { %p758_p4 = scmp.lt.s32.totalorder %s4798_s14, 3  ;;  %p753_p10 = scmp.lt.s32.totalorder %s4799_s0, 1 }
  0xe1   : > { %p2702_p11 = scmp.ne.s32.totalorder %s4798_s14, 0 }
  0xe2   : > { %s4057_s5 = scalar_select %p758_p4, %s4798_s14, 3 }
  0xe3   : > { %s4855_s0 = smov (!%p753_p10, %s4799_s0), 1 }
  0xe4   : > { %s4060_s10 = sshll.u32 %s4057_s5, 6  ;;  %s2717_s24 = sshll.u32 %s4855_s0, 6 }
  0xe5   : > { %s4066_s6 = scalar_lea.vmem %s4800_s27, %s4060_s10  ;;  %s4077_s11 = scalar_lea.vmem %s4801_s19, %s4060_s10 }
  0xe6   : > { %v3176_v0 = vld [vmem:[%s4066_s6] sm:$0xff]   ;;  %v3177_v1 = vld [vmem:[%s4066_s6 + $0x8] sm:$0xff]   ;;  %v3178_v2 = vld [vmem:[%s4066_s6 + $0x10] sm:$0xff]   ;;  %s4094_s3 = scalar_lea.vmem %s4802_s18, %s2717_s24  ;;  %s4804_s27 = sld [smem:[#allocation38_spill]] }
  0xe7   : > { %2846 = vmatprep.subr.bf16.mxu1 %v3176_v0  ;;  %v3179_v3 = vld [vmem:[%s4066_s6 + $0x18] sm:$0xff]   ;;  %v3180_v5 = vld [vmem:[%s4066_s6 + $0x20] sm:$0xff]   ;;  %v3181_v7 = vld [vmem:[%s4066_s6 + $0x28] sm:$0xff]   ;;  %s4805_s19 = sld [smem:[#allocation41_spill]]  ;;  %s2721_s15 = sshll.u32 %s4057_s5, 7 }
  0xe8   : > { %2847 = vmatpush3.bf16.msra.mxu1 %v3176_v0  ;;  %v3188_v6 = vld [vmem:[%s4077_s11] sm:$0xff]   ;;  %v3191_v8 = vld [vmem:[%s4077_s11 + $0x8] sm:$0xff]   ;;  %v3192_v9 = vld [vmem:[%s4077_s11 + $0x10] sm:$0xff]  }
  0xe9   : > { %2848 = vmatprep.subr.bf16.mxu1 %v3177_v1  ;;  %2814 = vmatprep.subr.bf16.mxu0 %v3188_v6  ;;  %v3182_v10 = vld [vmem:[%s4066_s6 + $0x30] sm:$0xff]   ;;  %v3193_v11 = vld [vmem:[%s4077_s11 + $0x18] sm:$0xff]   ;;  %v3194_v13 = vld [vmem:[%s4077_s11 + $0x20] sm:$0xff]  }
  0xea   : > { %2815 = vmatpush3.bf16.msra.mxu0 %v3188_v6  ;;  %v3183_v12 = vld [vmem:[%s4066_s6 + $0x38] sm:$0xff]   ;;  %v3200_v14 = vld [vmem:[%s4094_s3] sm:$0xff]   ;;  %v3197_v15 = vld [vmem:[%s4077_s11 + $0x28] sm:$0xff]  }
  0xeb   : > { %2816 = vmatprep.subr.bf16.mxu0 %v3191_v8  ;;  %2830 = vmatprep.mubr.bf16.mxu0 %v3200_v14  ;;  %v3198_v18 = vld [vmem:[%s4077_s11 + $0x30] sm:$0xff]   ;;  %v3199_v19 = vld [vmem:[%s4077_s11 + $0x38] sm:$0xff]   ;;  %v3201_v22 = vld [vmem:[%s4094_s3 + $0x8] sm:$0xff]   ;;  %s4803_s11 = sld [smem:[#allocation40_spill]] }
  0xec   : > { %2849 = vmatpush3.bf16.msra.mxu1 %v3177_v1  ;;  %v3202_v23 = vld [vmem:[%s4094_s3 + $0x10] sm:$0xff]   ;;  %v3203_v26 = vld [vmem:[%s4094_s3 + $0x18] sm:$0xff]   ;;  %v3204_v27 = vld [vmem:[%s4094_s3 + $0x20] sm:$0xff]   ;;  %s765_s18 = scalar_lea.vmem %s4804_s27, %s4057_s5 }
  0xed   : > { %2850 = vmatprep.subr.bf16.mxu1 %v3178_v2  ;;  %v3205_v29 = vld [vmem:[%s4094_s3 + $0x28] sm:$0xff]   ;;  %v3206_v30 = vld [vmem:[%s4094_s3 + $0x30] sm:$0xff]   ;;  %v3207_v31 = vld [vmem:[%s4094_s3 + $0x38] sm:$0xff]  }
  0xee   : > { %2817 = vmatpush3.bf16.msra.mxu0 %v3191_v8  ;;  %v4135_v49 = vld [vmem:[%s765_s18] ss:$0 sm:$0xff]  ;;  %s4807_s18 = sld [smem:[#allocation46_spill]] }
  0xef   : > { %2818 = vmatprep.subr.bf16.mxu0 %v3192_v9 }
  0xf0   : > { %2851 = vmatpush3.bf16.msra.mxu1 %v3178_v2 }
  0xf1   : > { %2852 = vmatprep.subr.bf16.mxu1 %v3179_v3  ;;  %s773_s24 = scalar_lea.vmem %s4803_s11, %s4057_s5  ;;  %s778_s11 = scalar_lea.vmem %s4805_s19, %s4060_s10 }
  0xf2   : > { %2819 = vmatpush3.bf16.msra.mxu0 %v3192_v9  ;;  %v4120_v33 = vld [vmem:[%s773_s24] ss:$0 sm:$0xff]  ;;  %s4806_s10 = sld [smem:[#allocation20_spill]]  ;;  %s2722_s24 = sshll.u32 %s4855_s0, 7 }
  0xf3   : > { %2820 = vmatprep.subr.bf16.mxu0 %v3193_v11 }
  0xf4   : > { %2853 = vmatpush3.bf16.msra.mxu1 %v3179_v3  ;;  %s4210_s3 = scalar_lea.vmem %s4807_s18, %s2722_s24  ;;  %s4811_s18 = sld [smem:[#allocation44_spill]] (!%p2702_p11) }
  0xf5   : > { %2854 = vmatprep.subr.bf16.mxu1 %v3180_v5 }
  0xf6   : > { %2821 = vmatpush3.bf16.msra.mxu0 %v3193_v11 }
  0xf7   : > { %2822 = vmatprep.subr.bf16.mxu0 %v3194_v13 }
  0xf8   : > { %2855 = vmatpush3.bf16.msra.mxu1 %v3180_v5 }
  0xf9   : > { %2856 = vmatprep.subr.bf16.mxu1 %v3181_v7 }
  0xfa   : > { %2823 = vmatpush3.bf16.msra.mxu0 %v3194_v13 }
  0xfb   : > { %2824 = vmatprep.subr.bf16.mxu0 %v3197_v15 }
  0xfc   : > { %2857 = vmatpush3.bf16.msra.mxu1 %v3181_v7 }
  0xfd   : > { %2858 = vmatprep.subr.bf16.mxu1 %v3182_v10 }
  0xfe   : > { %2825 = vmatpush3.bf16.msra.mxu0 %v3197_v15 }
  0xff   : > { %2826 = vmatprep.subr.bf16.mxu0 %v3198_v18 }
 0x100   : > { %2859 = vmatpush3.bf16.msra.mxu1 %v3182_v10 }
 0x101   : > { %2860 = vmatprep.subr.bf16.mxu1 %v3183_v12 }
 0x102   : > { %2827 = vmatpush3.bf16.msra.mxu0 %v3198_v18 }
 0x103   : > { %2828 = vmatprep.subr.bf16.mxu0 %v3199_v19 }
 0x104   : > { %2861 = vmatpush3.bf16.msra.mxu1 %v3183_v12 }
 0x106   : > { %2829 = vmatpush3.bf16.msra.mxu0 %v3199_v19 }
 0x107   : > { %2863 = vmatmul.mubr.bf16.vlgmr.msra.gmra.mrb[0].mxu1 %v3185_v16 }
 0x108   : > { %2866 = vmatprep.mubr.bf16.mxu1 %v3186_v17 }
 0x109   : > { %2831 = vmatmul.mubr.bf16.vlgmr.msra.gmra.mrb[0].mxu0 %v3201_v22 }
 0x10a   : > { %2834 = vmatprep.mubr.bf16.mxu0 %v3202_v23 }
 0x10f   : > { %2867 = vmatmul.mubr.bf16.gmra.mrb[4].mxu1 %v3187_v20 }
 0x110   : > { %2870 = vmatprep.mubr.bf16.mxu1 %v3189_v21 }
 0x111   : > { %2835 = vmatmul.mubr.bf16.gmra.mrb[4].mxu0 %v3203_v26 }
 0x112   : > { %2838 = vmatprep.mubr.bf16.mxu0 %v3204_v27 }
 0x117   : > { %2871 = vmatmul.mubr.bf16.gmra.mrb[8].mxu1 %v3190_v24 }
 0x118   : > { %2874 = vmatprep.mubr.bf16.mxu1 %v3195_v25 }
 0x119   : > { %2839 = vmatmul.mubr.bf16.gmra.mrb[8].mxu0 %v3205_v29 }
 0x11a   : > { %2842 = vmatprep.mubr.bf16.mxu0 %v3206_v30 }
 0x11f   : > { %2875 = vmatmul.mubr.bf16.gmra.mrb[12].mxu1 %v3196_v28 }
 0x121   : > { %2843 = vmatmul.mubr.bf16.gmra.mrb[12].mxu0 %v3207_v31 }
 0x1da   : > { %v2864_v32 = vpop.f32.mrb[0].mxu1 }
 0x1db   : > { %v1194_v34 = vpop.f32.mrb[1].mxu1  ;;  %v1203_v36 = vadd.f32 %v2864_v32, %v4120_v33 }
 0x1dc   : > { %v2865_v35 = vpop.f32.mrb[2].mxu1  ;;  %v1195_v39 = vadd.f32 %v4120_v33, %v1194_v34  ;;  %v2832_v53 = vpop.f32.mrb[0].mxu0 }
 0x1dd   : > { %v1206_v37 = vadd.f32 %v2865_v35, %v4120_v33  ;;  %v1197_v38 = vpop.f32.mrb[3].mxu1  ;;  %v4140_v55 = vadd.f32 %v2832_v53, %v4135_v49  ;;  %v962_v56 = vpop.f32.mrb[1].mxu0 }
 0x1de   : > { %v1198_v40 = vadd.f32 %v4120_v33, %v1197_v38  ;;  %v963_v58 = vadd.f32 %v4135_v49, %v962_v56  ;;  %v2833_v59 = vpop.f32.mrb[2].mxu0 }
 0x1df   : > { %v1498_v41 = vpack.c.bf16 %v1206_v37, %v1203_v36  ;;  %v4144_v60 = vadd.f32 %v2833_v59, %v4135_v49  ;;  %v965_v61 = vpop.f32.mrb[3].mxu0 }
 0x1e0   : > { %v1497_v42 = vpack.c.bf16 %v1198_v40, %v1195_v39  ;;  %v966_v0 = vadd.f32 %v4135_v49, %v965_v61  ;;  %v3211_v61 = vld [vmem:[%s778_s11 + $0x18] sm:$0xff]  }
 0x1e1   : > { %v1550_v62 = vsel %vm1521_vm0, %v1498_v41, 0  ;;  %v1490_v3 = vpack.c.bf16 %v4144_v60, %v4140_v55  ;;  %v3209_v55 = vld [vmem:[%s778_s11 + $0x8] sm:$0xff]   ;;  %v3210_v60 = vld [vmem:[%s778_s11 + $0x10] sm:$0xff]  }
 0x1e2   : > { %3010 = vmatprep.subr.msk.bf16.mxu1 %vm1521_vm0, %v1497_v42  ;;  %v1547_v43 = vsel %vm1521_vm0, %v1497_v42, 0  ;;  %v2868_v44 = vpop.f32.mrb[4].mxu1  ;;  %v1489_v6 = vpack.c.bf16 %v966_v0, %v963_v58  ;;  %v3213_v0 = vld [vmem:[%s778_s11 + $0x28] sm:$0xff]  }
 0x1e3   : > { %2911 = vmatpush3.bf16.xpose.msra.mxu1 %v1547_v43  ;;  %v1219_v45 = vadd.f32 %v2868_v44, %v4120_v33  ;;  %v1210_v46 = vpop.f32.mrb[5].mxu1 }
 0x1e4   : > { %3011 = vmatprep.subr.msk.bf16.mxu1 %vm1521_vm0, %v1498_v41  ;;  %v1211_v47 = vadd.f32 %v4120_v33, %v1210_v46  ;;  %v2869_v48 = vpop.f32.mrb[6].mxu1  ;;  %2926 = vmatprep.mubr.msk.bf16.mxu1 %vm1521_vm0, %v1489_v6  ;;  %v2836_v10 = vpop.f32.mrb[4].mxu0  ;;  %v3220_v6 = vld [vmem:[%s4036_s4 + $0x20] sm:$0xff]  }
 0x1e5   : > { %v1222_v50 = vadd.f32 %v2869_v48, %v4120_v33  ;;  %v1213_v51 = vpop.f32.mrb[7].mxu1  ;;  %v987_v12 = vadd.f32 %v2836_v10, %v4135_v49  ;;  %v978_v13 = vpop.f32.mrb[5].mxu0  ;;  %v1685_v10 = vld [vmem:[%s4210_s3 + $0x10] sm:$0xff] }
 0x1e6   : > { %v1214_v52 = vadd.f32 %v4120_v33, %v1213_v51  ;;  %v979_v15 = vadd.f32 %v4135_v49, %v978_v13  ;;  %v2837_v16 = vpop.f32.mrb[6].mxu0 }
 0x1e7   : > { %v1500_v54 = vpack.c.bf16 %v1222_v50, %v1219_v45  ;;  %v990_v17 = vadd.f32 %v2837_v16, %v4135_v49  ;;  %v981_v18 = vpop.f32.mrb[7].mxu0 }
 0x1e8   : > { %v1499_v57 = vpack.c.bf16 %v1214_v52, %v1211_v47  ;;  %v982_v21 = vadd.f32 %v4135_v49, %v981_v18 }
 0x1e9   : > { %v1492_v24 = vpack.c.bf16 %v990_v17, %v987_v12  ;;  %v1556_v41 = vsel %vm1521_vm0, %v1500_v54, 0  ;;  %v1683_v12 = vld [vmem:[%s4210_s3] sm:$0xff]  ;;  %v1701_v17 = vmul.f32 -1e+09, %v1685_v10 }
 0x1ea   : > { %v2872_v63 = vpop.f32.mrb[8].mxu1  ;;  %v1553_v19 = vsel %vm1521_vm0, %v1499_v57, 0  ;;  %v1491_v27 = vpack.c.bf16 %v982_v21, %v979_v15  ;;  %v1733_v15 = vld [vmem:[#allocation8 + $0x10] sm:$0xff]  ;;  %v1699_v21 = vmul.f32 -1e+09, %v1683_v12 }
 0x1eb   : > { %2913 = vmatpush3.bf16.xpose.msra.mxu1 %v1550_v62  ;;  %v1235_v1 = vadd.f32 %v2872_v63, %v4120_v33  ;;  %v1226_v2 = vpop.f32.mrb[9].mxu1  ;;  %v3216_v62 = vld [vmem:[%s4036_s4] sm:$0xff]  }
 0x1ec   : > { %3012 = vmatprep.subr.msk.bf16.mxu1 %vm1521_vm0, %v1499_v57  ;;  %v1227_v4 = vadd.f32 %v4120_v33, %v1226_v2  ;;  %v2873_v5 = vpop.f32.mrb[10].mxu1  ;;  %v2840_v31 = vpop.f32.mrb[8].mxu0  ;;  %2894 = vmatprep.mubr.bf16.mxu0 %v3216_v62  ;;  %v3212_v63 = vld [vmem:[%s778_s11 + $0x20] sm:$0xff]   ;;  %v3215_v2 = vld [vmem:[%s778_s11 + $0x38] sm:$0xff]  }
 0x1ed   : > { %v1238_v7 = vadd.f32 %v2873_v5, %v4120_v33  ;;  %v1229_v8 = vpop.f32.mrb[11].mxu1  ;;  %v1003_v34 = vadd.f32 %v2840_v31, %v4135_v49  ;;  %v994_v35 = vpop.f32.mrb[9].mxu0  ;;  %v3219_v5 = vld [vmem:[%s4036_s4 + $0x18] sm:$0xff]   ;;  %v1735_v62 = vld [vmem:[#allocation8 + $0x20] sm:$0xff] }
 0x1ee   : > { %v1230_v9 = vadd.f32 %v4120_v33, %v1229_v8  ;;  %v995_v37 = vadd.f32 %v4135_v49, %v994_v35  ;;  %v2841_v38 = vpop.f32.mrb[10].mxu0  ;;  %v3222_v8 = vld [vmem:[%s4036_s4 + $0x30] sm:$0xff]  }
 0x1ef   : > { %v1502_v11 = vpack.c.bf16 %v1238_v7, %v1235_v1  ;;  %v1006_v39 = vadd.f32 %v2841_v38, %v4135_v49  ;;  %v997_v40 = vpop.f32.mrb[11].mxu0  ;;  %v3214_v1 = vld [vmem:[%s778_s11 + $0x30] sm:$0xff]   ;;  %v3221_v7 = vld [vmem:[%s4036_s4 + $0x28] sm:$0xff]  }
 0x1f0   : > { %v1501_v14 = vpack.c.bf16 %v1230_v9, %v1227_v4  ;;  %v998_v42 = vadd.f32 %v4135_v49, %v997_v40  ;;  %v3218_v4 = vld [vmem:[%s4036_s4 + $0x10] sm:$0xff]   ;;  %v3223_v9 = vld [vmem:[%s4036_s4 + $0x38] sm:$0xff]  }
 0x1f1   : > { %v1494_v43 = vpack.c.bf16 %v1006_v39, %v1003_v34  ;;  %v1562_v57 = vsel %vm1521_vm0, %v1502_v11, 0  ;;  %v1732_v34 = vld [vmem:[#allocation8 + $0x8] sm:$0xff] }
 0x1f2   : > { %v2876_v20 = vpop.f32.mrb[12].mxu1  ;;  %v1559_v52 = vsel %vm1521_vm0, %v1501_v14, 0 }
 0x1f3   : > { %2915 = vmatpush3.bf16.xpose.msra.mxu1 %v1553_v19  ;;  %v1251_v22 = vadd.f32 %v2876_v20, %v4120_v33  ;;  %v1242_v23 = vpop.f32.mrb[13].mxu1 }
 0x1f4   : > { %3013 = vmatprep.subr.msk.bf16.mxu1 %vm1521_vm0, %v1500_v54  ;;  %v1243_v25 = vadd.f32 %v4120_v33, %v1242_v23  ;;  %v2877_v26 = vpop.f32.mrb[14].mxu1  ;;  %v2844_v44 = vpop.f32.mrb[12].mxu0  ;;  %v1684_v23 = vld [vmem:[%s4210_s3 + $0x8] sm:$0xff] }
 0x1f5   : > { %v1254_v28 = vadd.f32 %v2877_v26, %v4120_v33  ;;  %v1245_v29 = vpop.f32.mrb[15].mxu1  ;;  %v1019_v45 = vadd.f32 %v2844_v44, %v4135_v49  ;;  %v1010_v46 = vpop.f32.mrb[13].mxu0  ;;  %v1689_v44 = vld [vmem:[%s4210_s3 + $0x30] sm:$0xff] }
 0x1f6   : > { %v1246_v30 = vadd.f32 %v4120_v33, %v1245_v29  ;;  %v1493_v33 = vpack.c.bf16 %v998_v42, %v995_v37  ;;  %v1011_v47 = vadd.f32 %v4135_v49, %v1010_v46  ;;  %v2845_v48 = vpop.f32.mrb[14].mxu0  ;;  %v1734_v29 = vld [vmem:[#allocation8 + $0x18] sm:$0xff]  ;;  %v1700_v37 = vmul.f32 -1e+09, %v1684_v23 }
 0x1f7   : > { %v1504_v32 = vpack.c.bf16 %v1254_v28, %v1251_v22  ;;  %v1022_v50 = vadd.f32 %v2845_v48, %v4135_v49  ;;  %v1013_v51 = vpop.f32.mrb[15].mxu0  ;;  %v1749_v28 = vmul.f32 -1e+09, %v1733_v15  ;;  %v1750_v42 = vmul.f32 -1e+09, %v1734_v29 }
 0x1f8   : > { %v1503_v36 = vpack.c.bf16 %v1246_v30, %v1243_v25  ;;  %v1014_v53 = vadd.f32 %v4135_v49, %v1013_v51  ;;  %v3208_v49 = vld [vmem:[%s778_s11] sm:$0xff]   ;;  %s4808_s11 = sld [smem:[#allocation45_spill]]  ;;  %v1690_v51 = vld [vmem:[%s4210_s3 + $0x38] sm:$0xff] }
 0x1f9   : > { %v1496_v54 = vpack.c.bf16 %v1022_v50, %v1019_v45  ;;  %v1568_v59 = vsel %vm1521_vm0, %v1504_v32, 0  ;;  %2878 = vmatprep.subr.bf16.mxu0 %v3208_v49  ;;  %v1748_v45 = vmul.f32 -1e+09, %v1732_v34  ;;  %v1687_v50 = vld [vmem:[%s4210_s3 + $0x20] sm:$0xff] }
 0x1fa   : > { %v1495_v56 = vpack.c.bf16 %v1014_v53, %v1011_v47  ;;  %v1565_v58 = vsel %vm1521_vm0, %v1503_v36, 0  ;;  %2879 = vmatpush3.bf16.msra.mxu0 %v3208_v49 }
 0x1fb   : > { %2917 = vmatpush3.bf16.xpose.msra.mxu1 %v1556_v41  ;;  %2880 = vmatprep.subr.bf16.mxu0 %v3209_v55 }
 0x1fc   : > { %3014 = vmatprep.subr.msk.bf16.mxu1 %vm1521_vm0, %v1501_v14  ;;  %v1686_v14 = vld [vmem:[%s4210_s3 + $0x18] sm:$0xff] }
 0x1fe   : > { %2881 = vmatpush3.bf16.msra.mxu0 %v3209_v55  ;;  %s4215_s2 = scalar_lea.vmem %s4808_s11, %s2721_s15  ;;  %s4809_s15 = sld [smem:[#allocation42_spill]] }
 0x1ff   : > { %2882 = vmatprep.subr.bf16.mxu0 %v3210_v60  ;;  %v1505_v13 = vld [vmem:[%s4215_s2] sm:$0xff]  ;;  %v1508_v18 = vld [vmem:[%s4215_s2 + $0x18] sm:$0xff]  ;;  %v1506_v22 = vld [vmem:[%s4215_s2 + $0x8] sm:$0xff] }
 0x200   : > { %v1511_v41 = vld [vmem:[%s4215_s2 + $0x30] sm:$0xff]  ;;  %v1509_v48 = vld [vmem:[%s4215_s2 + $0x20] sm:$0xff]  ;;  %v1510_v55 = vld [vmem:[%s4215_s2 + $0x28] sm:$0xff] }
 0x201   : > { %v1513_v23 = vld [vmem:[%s4215_s2 + $0x40] sm:$0xff]  ;;  %v1516_v29 = vld [vmem:[%s4215_s2 + $0x58] sm:$0xff] }
 0x202   : > { %2883 = vmatpush3.bf16.msra.mxu0 %v3210_v60  ;;  %v1688_v60 = vld [vmem:[%s4210_s3 + $0x28] sm:$0xff] }
 0x203   : > { %2919 = vmatpush3.bf16.xpose.msra.mxu1 %v1559_v52  ;;  %2884 = vmatprep.subr.bf16.mxu0 %v3211_v61  ;;  %v1704_v12 = vmul.f32 -1e+09, %v1688_v60 }
 0x204   : > { %3015 = vmatprep.subr.msk.bf16.mxu1 %vm1521_vm0, %v1502_v11  ;;  %v1507_v11 = vld [vmem:[%s4215_s2 + $0x10] sm:$0xff]  ;;  %s781_s1 = scalar_lea.vmem %s4809_s15, %s4057_s5 }
 0x206   : > { %2885 = vmatpush3.bf16.msra.mxu0 %v3211_v61 }
 0x207   : > { %2886 = vmatprep.subr.bf16.mxu0 %v3212_v63 }
 0x20a   : > { %2887 = vmatpush3.bf16.msra.mxu0 %v3212_v63 }
 0x20b   : > { %2921 = vmatpush3.bf16.xpose.msra.mxu1 %v1562_v57  ;;  %2888 = vmatprep.subr.bf16.mxu0 %v3213_v0  ;;  %v1737_v57 = vld [vmem:[#allocation8 + $0x30] sm:$0xff] }
 0x20c   : > { %3016 = vmatprep.subr.msk.bf16.mxu1 %vm1521_vm0, %v1503_v36 }
 0x20e   : > { %2889 = vmatpush3.bf16.msra.mxu0 %v3213_v0  ;;  %v1703_v0 = vmul.f32 -1e+09, %v1687_v50  ;;  %v1740_v50 = vld [vmem:[#allocation8 + $0x48] sm:$0xff] }
 0x20f   : > { %2890 = vmatprep.subr.bf16.mxu0 %v3214_v1 }
 0x212   : > { %2891 = vmatpush3.bf16.msra.mxu0 %v3214_v1 }
 0x213   : > { %2923 = vmatpush3.bf16.xpose.msra.mxu1 %v1565_v58  ;;  %2892 = vmatprep.subr.bf16.mxu0 %v3215_v2 }
 0x214   : > { %3017 = vmatprep.subr.msk.bf16.mxu1 %vm1521_vm0, %v1504_v32 }
 0x216   : > { %2893 = vmatpush3.bf16.msra.mxu0 %v3215_v2  ;;  %v1706_v2 = vmul.f32 -1e+09, %v1690_v51 }
 0x21b   : > { %2925 = vmatpush3.bf16.xpose.msra.mxu1 %v1568_v59  ;;  %v1705_v59 = vmul.f32 -1e+09, %v1689_v44  ;;  %v1742_v44 = vld [vmem:[#allocation8 + $0x58] sm:$0xff] }
 0x222   : > { %2927 = vmatmul.mubr.msk.bf16.vlgmr.msra.gmra.mrb[16].mxu1 %vm1521_vm0, %v1490_v3  ;;  %v3217_v3 = vld [vmem:[%s4036_s4 + $0x8] sm:$0xff]   ;;  %s4728_s4 = sand.u32 1, %s4806_s10  }
 0x223   : > { %2930 = vmatprep.mubr.msk.bf16.mxu1 %vm1521_vm0, %v1491_v27  ;;  %2895 = vmatmul.mubr.bf16.vlgmr.msra.gmra.mrb[16].mxu0 %v3217_v3  ;;  %v1702_v27 = vmul.f32 -1e+09, %v1686_v14  ;;  %s2620_s0 = sshll.u32 %s4728_s4, 7 }
 0x224   : > { %2898 = vmatprep.mubr.bf16.mxu0 %v3218_v4  ;;  %s4239_s10 = scalar_lea.vmem [#allocation11], %s2620_s0  ;;  %v1738_v4 = vld [vmem:[#allocation8 + $0x38] sm:$0xff] }
 0x22a   : > { %2931 = vmatmul.mubr.msk.bf16.gmra.mrb[20].mxu1 %vm1521_vm0, %v1492_v24  ;;  %v1731_v24 = vld [vmem:[#allocation8] sm:$0xff] }
 0x22b   : > { %2934 = vmatprep.mubr.msk.bf16.mxu1 %vm1521_vm0, %v1493_v33  ;;  %2899 = vmatmul.mubr.bf16.gmra.mrb[20].mxu0 %v3219_v5  ;;  %v1747_v38 = vmul.f32 -1e+09, %v1731_v24  ;;  %v1691_v24 = vld [vmem:[%s4210_s3 + $0x40] sm:$0xff] }
 0x22c   : > { %2902 = vmatprep.mubr.bf16.mxu0 %v3220_v6 }
 0x232   : > { %2935 = vmatmul.mubr.msk.bf16.gmra.mrb[24].mxu1 %vm1521_vm0, %v1494_v43 }
 0x233   : > { %2938 = vmatprep.mubr.msk.bf16.mxu1 %vm1521_vm0, %v1495_v56  ;;  %2903 = vmatmul.mubr.bf16.gmra.mrb[24].mxu0 %v3221_v7 }
 0x234   : > { %2906 = vmatprep.mubr.bf16.mxu0 %v3222_v8  ;;  %v1736_v8 = vld [vmem:[#allocation8 + $0x28] sm:$0xff] }
 0x23a   : > { %2939 = vmatmul.mubr.msk.bf16.gmra.mrb[28].mxu1 %vm1521_vm0, %v1496_v54  ;;  %v1512_v54 = vld [vmem:[%s4215_s2 + $0x38] sm:$0xff] }
 0x23b   : > { %2907 = vmatmul.mubr.bf16.gmra.mrb[28].mxu0 %v3223_v9  ;;  %v1753_v9 = vmul.f32 -1e+09, %v1737_v57 }
 0x2f5   : > { %v2928_v16 = vpop.f32.mrb[16].mxu1 }
 0x2f6   : > { %v1613_v19 = vadd.f32 %v2928_v16, %v1507_v11  ;;  %v1604_v20 = vpop.f32.mrb[17].mxu1  ;;  %v1754_v16 = vmul.f32 -1e+09, %v1738_v4  ;;  %v1695_v4 = vld [vmem:[%s4210_s3 + $0x60] sm:$0xff] }
 0x2f7   : > { %v1605_v25 = vadd.f32 %v1604_v20, %v1505_v13  ;;  %v2929_v26 = vpop.f32.mrb[18].mxu1  ;;  %v1751_v13 = vmul.f32 -1e+09, %v1735_v62  ;;  %v1693_v20 = vld [vmem:[%s4210_s3 + $0x50] sm:$0xff] }
 0x2f8   : > { %v1669_v30 = vmul.f32 0.17677669, %v1613_v19  ;;  %v1616_v31 = vadd.f32 %v2929_v26, %v1508_v18  ;;  %v1607_v32 = vpop.f32.mrb[19].mxu1  ;;  %v1515_v19 = vld [vmem:[%s4215_s2 + $0x50] sm:$0xff]  ;;  %v1709_v34 = vmul.f32 -1e+09, %v1693_v20 }
 0x2f9   : > { %v1667_v35 = vmul.f32 0.17677669, %v1605_v25  ;;  %v1608_v36 = vadd.f32 %v1607_v32, %v1506_v22  ;;  %v1694_v25 = vld [vmem:[%s4210_s3 + $0x58] sm:$0xff]  ;;  %v1519_v62 = vld [vmem:[%s4215_s2 + $0x70] sm:$0xff]  ;;  %v1711_v20 = vmul.f32 -1e+09, %v1695_v4 }
 0x2fa   : > { %v1717_v39 = vadd.f32 %v1701_v17, %v1669_v30  ;;  %v1670_v40 = vmul.f32 0.17677669, %v1616_v31  ;;  %v1741_v31 = vld [vmem:[#allocation8 + $0x50] sm:$0xff] }
 0x2fb   : > { %v1715_v43 = vadd.f32 %v1699_v21, %v1667_v35  ;;  %v1668_v33 = vmul.f32 0.17677669, %v1608_v36  ;;  %v1752_v21 = vmul.f32 -1e+09, %v1736_v8  ;;  %v1514_v36 = vld [vmem:[%s4215_s2 + $0x48] sm:$0xff] }
 0x2fc   : > { %v1718_v46 = vadd.f32 %v1702_v27, %v1670_v40  ;;  %v4230_v47 = vadd.f32 %v1749_v28, %v1717_v39  ;;  %v1739_v39 = vld [vmem:[#allocation8 + $0x40] sm:$0xff]  ;;  %v1757_v51 = vmul.f32 -1e+09, %v1741_v31 }
 0x2fd   : > { %v1716_v52 = vadd.f32 %v1700_v37, %v1668_v33  ;;  %v2932_v53 = vpop.f32.mrb[20].mxu1  ;;  %v4236_v56 = vadd.f32 %v1747_v38, %v1715_v43  ;;  %v1692_v37 = vld [vmem:[%s4210_s3 + $0x48] sm:$0xff]  ;;  %v1710_v43 = vmul.f32 -1e+09, %v1694_v25  ;;  %v1755_v57 = vmul.f32 -1e+09, %v1739_v39 }
 0x2fe   : > { %v1629_v58 = vadd.f32 %v2932_v53, %v1511_v41  ;;  %1799 = vmax.xlane.f32.xlu1 %v4230_v47  ;;  %1781 = vst [vmem:[%s4239_s10 + $0x10] sm:$0xff] %v4230_v47  ;;  %v1620_v49 = vpop.f32.mrb[21].mxu1  ;;  %v4245_v61 = vadd.f32 %v1750_v42, %v1718_v46  ;;  %v1707_v41 = vmul.f32 -1e+09, %v1691_v24  ;;  %v1746_v24 = vld [vmem:[#allocation8 + $0x78] sm:$0xff] }
 0x2ff   : > { %v1621_v63 = vadd.f32 %v1620_v49, %v1509_v48  ;;  %v2933_v1 = vpop.f32.mrb[22].mxu1  ;;  %1795 = vmax.xlane.f32.xlu0 %v4236_v56  ;;  %1779 = vst [vmem:[%s4239_s10] sm:$0xff] %v4236_v56  ;;  %v4250_v3 = vadd.f32 %v1748_v45, %v1716_v52  ;;  %v1758_v49 = vmul.f32 -1e+09, %v1742_v44 }
 0x300   : > { %v1673_v5 = vmul.f32 0.17677669, %v1629_v58  ;;  %v1632_v6 = vadd.f32 %v2933_v1, %v1512_v54  ;;  %v1623_v7 = vpop.f32.mrb[23].mxu1  ;;  %1782 = vst [vmem:[%s4239_s10 + $0x18] sm:$0xff] %v4245_v61  ;;  %v1708_v54 = vmul.f32 -1e+09, %v1692_v37 }
 0x301   : > { %v1671_v10 = vmul.f32 0.17677669, %v1621_v63  ;;  %v1624_v11 = vadd.f32 %v1623_v7, %v1510_v55  ;;  %1780 = vst [vmem:[%s4239_s10 + $0x8] sm:$0xff] %v4250_v3  ;;  %v1697_v63 = vld [vmem:[%s4210_s3 + $0x70] sm:$0xff] }
 0x302   : > { %v1721_v14 = vadd.f32 %v1705_v59, %v1673_v5  ;;  %v1674_v15 = vmul.f32 0.17677669, %v1632_v6  ;;  %1801 = vmax.xlane.f32.xlu1 %v4245_v61  ;;  %v1698_v5 = vld [vmem:[%s4210_s3 + $0x78] sm:$0xff] }
 0x303   : > { %v1719_v17 = vadd.f32 %v1703_v0, %v1671_v10  ;;  %v1672_v18 = vmul.f32 0.17677669, %v1624_v11  ;;  %1797 = vmax.xlane.f32.xlu0 %v4250_v3  ;;  %v1756_v0 = vmul.f32 -1e+09, %v1740_v50  ;;  %v1745_v11 = vld [vmem:[#allocation8 + $0x70] sm:$0xff] }
 0x304   : > { %v1722_v22 = vadd.f32 %v1706_v2, %v1674_v15  ;;  %v4263_v26 = vadd.f32 %v1753_v9, %v1721_v14  ;;  %v1517_v2 = vld [vmem:[%s4215_s2 + $0x60] sm:$0xff]  ;;  %v1520_v9 = vld [vmem:[%s4215_s2 + $0x78] sm:$0xff]  ;;  %v1518_v15 = vld [vmem:[%s4215_s2 + $0x68] sm:$0xff]  ;;  %v1761_v31 = vmul.f32 -1e+09, %v1745_v11 }
 0x305   : > { %v1720_v27 = vadd.f32 %v1704_v12, %v1672_v18  ;;  %v2936_v28 = vpop.f32.mrb[24].mxu1  ;;  %v4266_v30 = vadd.f32 %v1751_v13, %v1719_v17  ;;  %v1713_v13 = vmul.f32 -1e+09, %v1697_v63  ;;  %v1743_v18 = vld [vmem:[#allocation8 + $0x60] sm:$0xff] }
 0x306   : > { %v1645_v32 = vadd.f32 %v2936_v28, %v1515_v19  ;;  %v1636_v35 = vpop.f32.mrb[25].mxu1  ;;  %1785 = vst [vmem:[%s4239_s10 + $0x30] sm:$0xff] %v4263_v26  ;;  %v4272_v38 = vadd.f32 %v1754_v16, %v1722_v22  ;;  %v1696_v16 = vld [vmem:[%s4210_s3 + $0x68] sm:$0xff]  ;;  %v1714_v22 = vmul.f32 -1e+09, %v1698_v5 }
 0x307   : > { %v1637_v40 = vadd.f32 %v1636_v35, %v1513_v23  ;;  %v2937_v42 = vpop.f32.mrb[26].mxu1  ;;  %1783 = vst [vmem:[%s4239_s10 + $0x20] sm:$0xff] %v4266_v30  ;;  %1803 = vmax.xlane.f32.xlu0 %v4266_v30  ;;  %v4277_v33 = vadd.f32 %v1752_v21, %v1720_v27  ;;  %v1712_v35 = vmul.f32 -1e+09, %v1696_v16 }
 0x308   : > { %v1677_v45 = vmul.f32 0.17677669, %v1645_v32  ;;  %v1648_v46 = vadd.f32 %v2937_v42, %v1516_v29  ;;  %v1639_v48 = vpop.f32.mrb[27].mxu1  ;;  %1786 = vst [vmem:[%s4239_s10 + $0x38] sm:$0xff] %v4272_v38  ;;  %v1744_v29 = vld [vmem:[#allocation8 + $0x68] sm:$0xff] }
 0x309   : > { %v1675_v52 = vmul.f32 0.17677669, %v1637_v40  ;;  %v1640_v53 = vadd.f32 %v1639_v48, %v1514_v36  ;;  %1805 = vmax.xlane.f32.xlu1 %v4277_v33  ;;  %1784 = vst [vmem:[%s4239_s10 + $0x28] sm:$0xff] %v4277_v33  ;;  %v1759_v36 = vmul.f32 -1e+09, %v1743_v18 }
 0x30a   : > { %v1725_v58 = vadd.f32 %v1709_v34, %v1677_v45  ;;  %v1678_v59 = vmul.f32 0.17677669, %v1648_v46  ;;  %v1762_v40 = vmul.f32 -1e+09, %v1746_v24 }
 0x30b   : > { %v1723_v55 = vadd.f32 %v1707_v41, %v1675_v52  ;;  %v1676_v60 = vmul.f32 0.17677669, %v1640_v53  ;;  %1807 = vmax.xlane.f32.xlu0 %v4263_v26 }
 0x30c   : > { %v1726_v1 = vadd.f32 %v1710_v43, %v1678_v59  ;;  %v4290_v6 = vadd.f32 %v1757_v51, %v1725_v58  ;;  %v1760_v43 = vmul.f32 -1e+09, %v1744_v29 }
 0x30d   : > { %v1724_v7 = vadd.f32 %v1708_v54, %v1676_v60  ;;  %v2940_v8 = vpop.f32.mrb[28].mxu1  ;;  %1809 = vmax.xlane.f32.xlu1 %v4272_v38  ;;  %v4294_v10 = vadd.f32 %v1755_v57, %v1723_v55 }
 0x30e   : > { %v1661_v12 = vadd.f32 %v2940_v8, %v1519_v62  ;;  %v1652_v14 = vpop.f32.mrb[29].mxu1  ;;  %1789 = vst [vmem:[%s4239_s10 + $0x50] sm:$0xff] %v4290_v6  ;;  %v4300_v17 = vadd.f32 %v1758_v49, %v1726_v1  ;;  %v4341_v62 = vld [vmem:[%s781_s1] ss:$0 sm:$0xff] }
 0x30f   : > { %v1653_v19 = vadd.f32 %v1652_v14, %v1517_v2  ;;  %v2941_v21 = vpop.f32.mrb[30].mxu1  ;;  %1787 = vst [vmem:[%s4239_s10 + $0x40] sm:$0xff] %v4294_v10  ;;  %1811 = vmax.xlane.f32.xlu0 %v4294_v10  ;;  %v4305_v23 = vadd.f32 %v1756_v0, %v1724_v7  ;;  %v2896_v0 = vpop.f32.mrb[16].mxu0 }
 0x310   : > { %v1681_v25 = vmul.f32 0.17677669, %v1661_v12  ;;  %v1664_v27 = vadd.f32 %v2941_v21, %v1520_v9  ;;  %v1655_v28 = vpop.f32.mrb[31].mxu1  ;;  %1790 = vst [vmem:[%s4239_s10 + $0x58] sm:$0xff] %v4300_v17  ;;  %v1426_v1 = vpop.f32.mrb[17].mxu0 }
 0x311   : > { %v1679_v32 = vmul.f32 0.17677669, %v1653_v19  ;;  %v1656_v34 = vadd.f32 %v1655_v28, %v1518_v15  ;;  %1788 = vst [vmem:[%s4239_s10 + $0x48] sm:$0xff] %v4305_v23  ;;  %1813 = vmax.xlane.f32.xlu1 %v4305_v23  ;;  %v1427_v2 = vadd.f32 %v4341_v62, %v1426_v1  ;;  %v2897_v4 = vpop.f32.mrb[18].mxu0 }
 0x312   : > { %v1729_v37 = vadd.f32 %v1713_v13, %v1681_v25  ;;  %v1682_v39 = vmul.f32 0.17677669, %v1664_v27  ;;  %v1438_v8 = vadd.f32 %v2897_v4, %v4341_v62 }
 0x313   : > { %v1727_v41 = vadd.f32 %v1711_v20, %v1679_v32  ;;  %v1680_v42 = vmul.f32 0.17677669, %v1656_v34  ;;  %1815 = vmax.xlane.f32.xlu0 %v4290_v6 }
 0x314   : > { %v1730_v44 = vadd.f32 %v1714_v22, %v1682_v39  ;;  %v4313_v45 = vadd.f32 %v1761_v31, %v1729_v37 }
 0x315   : > { %v1728_v46 = vadd.f32 %v1712_v35, %v1680_v42  ;;  %1817 = vmax.xlane.f32.xlu1 %v4300_v17  ;;  %v4316_v48 = vadd.f32 %v1759_v36, %v1727_v41 }
 0x316   : > { %1793 = vst [vmem:[%s4239_s10 + $0x70] sm:$0xff] %v4313_v45  ;;  %v4320_v50 = vadd.f32 %v1762_v40, %v1730_v44 }
 0x317   : > { %1791 = vst [vmem:[%s4239_s10 + $0x60] sm:$0xff] %v4316_v48  ;;  %1819 = vmax.xlane.f32.xlu0 %v4316_v48  ;;  %v4325_v51 = vadd.f32 %v1760_v43, %v1728_v46 }
 0x318   : > { %1794 = vst [vmem:[%s4239_s10 + $0x78] sm:$0xff] %v4320_v50 }
 0x319   : > { %1792 = vst [vmem:[%s4239_s10 + $0x68] sm:$0xff] %v4325_v51  ;;  %1821 = vmax.xlane.f32.xlu1 %v4325_v51 }
 0x31b   : > { %1823 = vmax.xlane.f32.xlu0 %v4313_v45 }
 0x31d   : > { %1825 = vmax.xlane.f32.xlu1 %v4320_v50 }
 0x38b   : > { %v1800_v52 = vpop.xlane.xlu1 %1799 }
 0x38c   : > { %v1829_v53 = vsub.f32 %v4230_v47, %v1800_v52  ;;  %v1796_v54 = vpop.xlane.xlu0 %1795  ;;  %v1435_v47 = vadd.f32 %v2896_v0, %v4341_v62 }
 0x38d   : > { %v1827_v57 = vsub.f32 %v4236_v56, %v1796_v54 }
 0x38e   : > { %v1847_v49 = vmul.f32 1.442695, %v1829_v53  ;;  %v1948_v12 = vpack.c.bf16 %v1438_v8, %v1435_v47 }
 0x38f   : > { %v1843_v58 = vmul.f32 1.442695, %v1827_v57  ;;  %v1802_v59 = vpop.xlane.xlu1 %1801 }
 0x390   : > { %v1830_v55 = vsub.f32 %v4245_v61, %v1802_v59  ;;  %v1798_v60 = vpop.xlane.xlu0 %1797  ;;  %v1429_v61 = vpop.f32.mrb[19].mxu0 }
 0x391   : > { %3226 = vpow2.f32 %v1843_v58  ;;  %v1828_v63 = vsub.f32 %v4250_v3, %v1798_v60  ;;  %v1430_v11 = vadd.f32 %v4341_v62, %v1429_v61  ;;  %v2900_v20 = vpop.f32.mrb[20].mxu0 }
 0x392   : > { %3228 = vpow2.f32 %v1847_v49  ;;  %v1849_v5 = vmul.f32 1.442695, %v1830_v55  ;;  %v1442_v22 = vpop.f32.mrb[21].mxu0 }
 0x393   : > { %v1845_v56 = vmul.f32 1.442695, %v1828_v63  ;;  %v1947_v15 = vpack.c.bf16 %v1430_v11, %v1427_v2  ;;  %v1443_v27 = vadd.f32 %v4341_v62, %v1442_v22  ;;  %v2901_v28 = vpop.f32.mrb[22].mxu0 }
 0x394   : > { %v1804_v7 = vpop.xlane.xlu0 %1803  ;;  %v1454_v29 = vadd.f32 %v2901_v28, %v4341_v62  ;;  %v1445_v31 = vpop.f32.mrb[23].mxu0 }
 0x395   : > { %3230 = vpow2.f32 %v1845_v56  ;;  %v1831_v9 = vsub.f32 %v4266_v30, %v1804_v7  ;;  %2942 = vmatprep.subr.bf16.mxu0 %v1947_v15  ;;  %2994 = vmatprep.subr.bf16.mxu1 %v1947_v15  ;;  %v1451_v30 = vadd.f32 %v2900_v20, %v4341_v62  ;;  %v1446_v35 = vadd.f32 %v4341_v62, %v1445_v31  ;;  %v2904_v46 = vpop.f32.mrb[24].mxu0  ;;  %v3224_v31 = vld [vmem:[%s648_s12] sm:$0xff]  }
 0x396   : > { %v1806_v3 = vpop.xlane.xlu1 %1805  ;;  %3232 = vpow2.f32 %v1849_v5  ;;  %2943 = vmatpush3.bf16.msra.mxu0 %v1947_v15  ;;  %3002 = vmatpush3.bf16.msra.mxu1 %v1947_v15  ;;  %v1467_v54 = vadd.f32 %v2904_v46, %v4341_v62 }
 0x397   : > { %v1851_v13 = vmul.f32 1.442695, %v1831_v9  ;;  %v1832_v14 = vsub.f32 %v4277_v33, %v1806_v3  ;;  %2944 = vmatprep.subr.bf16.mxu0 %v1948_v12  ;;  %2995 = vmatprep.subr.bf16.mxu1 %v1948_v12  ;;  %v1950_v37 = vpack.c.bf16 %v1454_v29, %v1451_v30  ;;  %v1949_v42 = vpack.c.bf16 %v1446_v35, %v1443_v27 }
 0x398   : > { %v1808_v16 = vpop.xlane.xlu0 %1807 }
 0x399   : > { %3234 = vpow2.f32 %v1851_v13  ;;  %v1853_v18 = vmul.f32 1.442695, %v1832_v14  ;;  %v1833_v19 = vsub.f32 %v4263_v26, %v1808_v16 }
 0x39a   : > { %v1810_v21 = vpop.xlane.xlu1 %1809  ;;  %2945 = vmatpush3.bf16.msra.mxu0 %v1948_v12  ;;  %3003 = vmatpush3.bf16.msra.mxu1 %v1948_v12 }
 0x39b   : > { %v4352_v24 = vpop.eup %3226  ;;  %v1855_v25 = vmul.f32 1.442695, %v1833_v19  ;;  %v1834_v33 = vsub.f32 %v4272_v38, %v1810_v21  ;;  %3236 = vpow2.f32 %v1853_v18  ;;  %2946 = vmatprep.subr.bf16.mxu0 %v1949_v42  ;;  %2996 = vmatprep.subr.bf16.mxu1 %v1949_v42 }
 0x39c   : > { %1875 = vadd.xlane.f32.xlu0 %v4352_v24  ;;  %v1812_v26 = vpop.xlane.xlu0 %1811  ;;  %v4360_v36 = vpop.eup %3228 }
 0x39d   : > { %3238 = vpow2.f32 %v1855_v25  ;;  %v1857_v32 = vmul.f32 1.442695, %v1834_v33  ;;  %v1835_v34 = vsub.f32 %v4294_v10, %v1812_v26 }
 0x39e   : > { %v1814_v38 = vpop.xlane.xlu1 %1813  ;;  %2947 = vmatpush3.bf16.msra.mxu0 %v1949_v42  ;;  %3004 = vmatpush3.bf16.msra.mxu1 %v1949_v42 }
 0x39f   : > { %v4362_v39 = vpop.eup %3230  ;;  %v1859_v40 = vmul.f32 1.442695, %v1835_v34  ;;  %v1836_v41 = vsub.f32 %v4305_v23, %v1814_v38  ;;  %3240 = vpow2.f32 %v1857_v32  ;;  %v1458_v23 = vpop.f32.mrb[25].mxu0  ;;  %2948 = vmatprep.subr.bf16.mxu0 %v1950_v37  ;;  %2997 = vmatprep.subr.bf16.mxu1 %v1950_v37 }
 0x3a0   : > { %1879 = vadd.xlane.f32.xlu0 %v4360_v36  ;;  %1877 = vadd.xlane.f32.xlu1 %v4362_v39  ;;  %v1816_v10 = vpop.xlane.xlu0 %1815  ;;  %v4368_v52 = vpop.eup %3232  ;;  %v1459_v49 = vadd.f32 %v4341_v62, %v1458_v23 }
 0x3a1   : > { %3242 = vpow2.f32 %v1859_v40  ;;  %v1861_v43 = vmul.f32 1.442695, %v1836_v41  ;;  %v1837_v44 = vsub.f32 %v4290_v6, %v1816_v10  ;;  %v2905_v55 = vpop.f32.mrb[26].mxu0 }
 0x3a2   : > { %v1818_v53 = vpop.xlane.xlu1 %1817  ;;  %v1470_v60 = vadd.f32 %v2905_v55, %v4341_v62  ;;  %v1461_v63 = vpop.f32.mrb[27].mxu0  ;;  %2949 = vmatpush3.bf16.msra.mxu0 %v1950_v37  ;;  %3005 = vmatpush3.bf16.msra.mxu1 %v1950_v37 }
 0x3a3   : > { %v4371_v57 = vpop.eup %3234  ;;  %v1863_v58 = vmul.f32 1.442695, %v1837_v44  ;;  %v1838_v59 = vsub.f32 %v4300_v17, %v1818_v53  ;;  %3244 = vpow2.f32 %v1861_v43  ;;  %v1462_v17 = vadd.f32 %v4341_v62, %v1461_v63  ;;  %v2908_v11 = vpop.f32.mrb[28].mxu0 }
 0x3a4   : > { %1881 = vadd.xlane.f32.xlu1 %v4368_v52  ;;  %1883 = vadd.xlane.f32.xlu0 %v4371_v57  ;;  %v1820_v6 = vpop.xlane.xlu0 %1819  ;;  %v1952_v2 = vpack.c.bf16 %v1470_v60, %v1467_v54  ;;  %v1483_v13 = vadd.f32 %v2908_v11, %v4341_v62 }
 0x3a5   : > { %3246 = vpow2.f32 %v1863_v58  ;;  %v1865_v0 = vmul.f32 1.442695, %v1838_v59  ;;  %v1839_v47 = vsub.f32 %v4316_v48, %v1820_v6  ;;  %v4380_v1 = vpop.eup %3236  ;;  %v1951_v8 = vpack.c.bf16 %v1462_v17, %v1459_v49 }
 0x3a6   : > { %v1822_v56 = vpop.xlane.xlu1 %1821 }
 0x3a7   : > { %v4382_v4 = vpop.eup %3238  ;;  %v1867_v5 = vmul.f32 1.442695, %v1839_v47  ;;  %v1840_v7 = vsub.f32 %v4325_v51, %v1822_v56  ;;  %3248 = vpow2.f32 %v1865_v0  ;;  %2950 = vmatprep.subr.bf16.mxu0 %v1951_v8  ;;  %2998 = vmatprep.subr.bf16.mxu1 %v1951_v8  ;;  %v1474_v51 = vpop.f32.mrb[29].mxu0  ;;  %v3225_v0 = vld [vmem:[%s648_s12 + $0x8] sm:$0xff]   ;;  %s4470_s12 = scalar_lea.vmem [#allocation10], %s4810_s8 }
 0x3a8   : > { %1885 = vadd.xlane.f32.xlu1 %v4380_v1  ;;  %1887 = vadd.xlane.f32.xlu0 %v4382_v4  ;;  %v1824_v48 = vpop.xlane.xlu0 %1823  ;;  %v1475_v18 = vadd.f32 %v4341_v62, %v1474_v51  ;;  %v2909_v19 = vpop.f32.mrb[30].mxu0 }
 0x3a9   : > { %3250 = vpow2.f32 %v1867_v5  ;;  %v1869_v61 = vmul.f32 1.442695, %v1840_v7  ;;  %v1841_v9 = vsub.f32 %v4313_v45, %v1824_v48  ;;  %v4388_v3 = vpop.eup %3240  ;;  %2951 = vmatpush3.bf16.msra.mxu0 %v1951_v8  ;;  %3006 = vmatpush3.bf16.msra.mxu1 %v1951_v8  ;;  %v1486_v45 = vadd.f32 %v2909_v19, %v4341_v62  ;;  %v1477_v20 = vpop.f32.mrb[31].mxu0 }
 0x3aa   : > { %v1826_v12 = vpop.xlane.xlu1 %1825  ;;  %2952 = vmatprep.subr.bf16.mxu0 %v1952_v2  ;;  %2999 = vmatprep.subr.bf16.mxu1 %v1952_v2  ;;  %v1478_v30 = vadd.f32 %v4341_v62, %v1477_v20 }
 0x3ab   : > { %v4391_v14 = vpop.eup %3242  ;;  %v1871_v15 = vmul.f32 1.442695, %v1841_v9  ;;  %v1842_v16 = vsub.f32 %v4320_v50, %v1826_v12  ;;  %3252 = vpow2.f32 %v1869_v61  ;;  %v1954_v50 = vpack.c.bf16 %v1486_v45, %v1483_v13 }
 0x3ac   : > { %1889 = vadd.xlane.f32.xlu1 %v4388_v3  ;;  %1891 = vadd.xlane.f32.xlu0 %v4391_v14  ;;  %v1953_v33 = vpack.c.bf16 %v1478_v30, %v1475_v18 }
 0x3ad   : > { %3254 = vpow2.f32 %v1871_v15  ;;  %v1873_v21 = vmul.f32 1.442695, %v1842_v16  ;;  %v4399_v22 = vpop.eup %3244  ;;  %2953 = vmatpush3.bf16.msra.mxu0 %v1952_v2  ;;  %3007 = vmatpush3.bf16.msra.mxu1 %v1952_v2 }
 0x3ae   : > { %2954 = vmatprep.subr.bf16.mxu0 %v1953_v33  ;;  %3000 = vmatprep.subr.bf16.mxu1 %v1953_v33 }
 0x3af   : > { %v4401_v25 = vpop.eup %3246  ;;  %3256 = vpow2.f32 %v1873_v21 }
 0x3b0   : > { %1893 = vadd.xlane.f32.xlu1 %v4399_v22  ;;  %1895 = vadd.xlane.f32.xlu0 %v4401_v25 }
 0x3b1   : > { %v4405_v27 = vpop.eup %3248  ;;  %2955 = vmatpush3.bf16.msra.mxu0 %v1953_v33  ;;  %3008 = vmatpush3.bf16.msra.mxu1 %v1953_v33 }
 0x3b2   : > { %2956 = vmatprep.subr.bf16.mxu0 %v1954_v50  ;;  %3001 = vmatprep.subr.bf16.mxu1 %v1954_v50 }
 0x3b3   : > { %v4407_v62 = vpop.eup %3250 }
 0x3b4   : > { %1897 = vadd.xlane.f32.xlu1 %v4405_v27  ;;  %1899 = vadd.xlane.f32.xlu0 %v4407_v62 }
 0x3b5   : > { %v4411_v28 = vpop.eup %3252  ;;  %2957 = vmatpush3.bf16.msra.mxu0 %v1954_v50  ;;  %3009 = vmatpush3.bf16.msra.mxu1 %v1954_v50 }
 0x3b6   : > { %2974 = vmatprep.subr.bf16.mxu0 %v3224_v31 }
 0x3b7   : > { %v4413_v26 = vpop.eup %3254 }
 0x3b8   : > { %1901 = vadd.xlane.f32.xlu1 %v4411_v28  ;;  %1903 = vadd.xlane.f32.xlu0 %v4413_v26 }
 0x3b9   : > { %v4417_v29 = vpop.eup %3256 }
 0x3bc   : > { %1905 = vadd.xlane.f32.xlu1 %v4417_v29 }
 0x429   : > { %v1876_v32 = vpop.xlane.xlu0 %1875 }
 0x42a   : > { %3258 = vrcp.f32 %v1876_v32 }
 0x42d   : > { %v1878_v34 = vpop.xlane.xlu1 %1877  ;;  %v1880_v35 = vpop.xlane.xlu0 %1879 }
 0x42e   : > { %3260 = vrcp.f32 %v1878_v34 }
 0x42f   : > { %3262 = vrcp.f32 %v1880_v35 }
 0x431   : > { %v1882_v38 = vpop.xlane.xlu1 %1881  ;;  %v1884_v37 = vpop.xlane.xlu0 %1883 }
 0x432   : > { %3264 = vrcp.f32 %v1882_v38 }
 0x433   : > { %3266 = vrcp.f32 %v1884_v37 }
 0x434   : > { %v3259_v42 = vpop.eup %3258 }
 0x435   : > { %v1886_v40 = vpop.xlane.xlu1 %1885  ;;  %v1888_v41 = vpop.xlane.xlu0 %1887  ;;  %v1923_v46 = vmul.f32 %v3259_v42, %v4352_v24 }
 0x436   : > { %3268 = vrcp.f32 %v1886_v40 }
 0x437   : > { %3270 = vrcp.f32 %v1888_v41 }
 0x438   : > { %v3261_v10 = vpop.eup %3260 }
 0x439   : > { %v1890_v43 = vpop.xlane.xlu1 %1889  ;;  %v1892_v44 = vpop.xlane.xlu0 %1891  ;;  %v1924_v53 = vmul.f32 %v3261_v10, %v4362_v39 }
 0x43a   : > { %v3263_v54 = vpop.eup %3262  ;;  %3272 = vrcp.f32 %v1890_v43 }
 0x43b   : > { %v1939_v23 = vpack.c.bf16 %v1924_v53, %v1923_v46  ;;  %3274 = vrcp.f32 %v1892_v44  ;;  %v1925_v59 = vmul.f32 %v3263_v54, %v4360_v36 }
 0x43c   : > { %v3265_v58 = vpop.eup %3264 }
 0x43d   : > { %v1926_v49 = vmul.f32 %v3265_v58, %v4368_v52  ;;  %v1894_v55 = vpop.xlane.xlu1 %1893  ;;  %2958 = vmatprep.mubr.bf16.mxu0 %v1939_v23  ;;  %v1896_v6 = vpop.xlane.xlu0 %1895 }
 0x43e   : > { %v3267_v60 = vpop.eup %3266  ;;  %3276 = vrcp.f32 %v1894_v55 }
 0x43f   : > { %v1940_v63 = vpack.c.bf16 %v1926_v49, %v1925_v59  ;;  %3278 = vrcp.f32 %v1896_v6  ;;  %v1927_v17 = vmul.f32 %v3267_v60, %v4371_v57 }
 0x440   : > { %v3269_v24 = vpop.eup %3268 }
 0x441   : > { %v1898_v39 = vpop.xlane.xlu1 %1897  ;;  %2959 = vmatmul.mubr.bf16.vlgmr.msra.gmra.mrb[32].mxu0 %v1940_v63  ;;  %v1900_v47 = vpop.xlane.xlu0 %1899  ;;  %v1928_v56 = vmul.f32 %v3269_v24, %v4380_v1 }
 0x442   : > { %v3271_v36 = vpop.eup %3270  ;;  %3280 = vrcp.f32 %v1898_v39  ;;  %2975 = vmatpush3.bf16.msra.mxu0 %v3224_v31 }
 0x443   : > { %v1941_v52 = vpack.c.bf16 %v1928_v56, %v1927_v17  ;;  %2976 = vmatprep.subr.bf16.mxu0 %v3225_v0  ;;  %3282 = vrcp.f32 %v1900_v47  ;;  %v1929_v8 = vmul.f32 %v3271_v36, %v4382_v4 }
 0x444   : > { %v3273_v2 = vpop.eup %3272 }
 0x445   : > { %v1902_v5 = vpop.xlane.xlu1 %1901  ;;  %2962 = vmatprep.mubr.bf16.mxu0 %v1941_v52  ;;  %v1904_v7 = vpop.xlane.xlu0 %1903  ;;  %v1930_v48 = vmul.f32 %v3273_v2, %v4388_v3 }
 0x446   : > { %v3275_v61 = vpop.eup %3274  ;;  %3284 = vrcp.f32 %v1902_v5  ;;  %2977 = vmatpush3.bf16.msra.mxu0 %v3225_v0 }
 0x447   : > { %v1942_v57 = vpack.c.bf16 %v1930_v48, %v1929_v8  ;;  %3286 = vrcp.f32 %v1904_v7  ;;  %v1931_v11 = vmul.f32 %v3275_v61, %v4391_v14  ;;  %v2703_v8 = vld [vmem:[%s4811_s18] ss:$0 sm:$0xff] (!%p2702_p11) }
 0x448   : > { %v3277_v9 = vpop.eup %3276 }
 0x449   : > { %v1906_v1 = vpop.xlane.xlu1 %1905  ;;  %2963 = vmatmul.mubr.bf16.gmra.mrb[36].mxu0 %v1942_v57  ;;  %v1932_v12 = vmul.f32 %v3277_v9, %v4399_v22  ;;  %v3279_v13 = vpop.eup %3278 }
 0x44a   : > { %3288 = vrcp.f32 %v1906_v1  ;;  %v1933_v4 = vmul.f32 %v3279_v13, %v4401_v25 }
 0x44b   : > { %v1943_v51 = vpack.c.bf16 %v1932_v12, %v1931_v11 }
 0x44c   : > { %v3281_v15 = vpop.eup %3280 }
 0x44d   : > { %v1934_v3 = vmul.f32 %v3281_v15, %v4405_v27  ;;  %2966 = vmatprep.mubr.bf16.mxu1 %v1943_v51  ;;  %v3283_v16 = vpop.eup %3282 }
 0x44e   : > { %v1935_v45 = vmul.f32 %v3283_v16, %v4407_v62 }
 0x44f   : > { %v1944_v18 = vpack.c.bf16 %v1934_v3, %v1933_v4 }
 0x450   : > { %v3285_v19 = vpop.eup %3284 }
 0x451   : > { %2967 = vmatmul.mubr.bf16.vlgmr.msra.gmra.mrb[32].mxu1 %v1944_v18  ;;  %v1936_v20 = vmul.f32 %v3285_v19, %v4411_v28  ;;  %v3287_v14 = vpop.eup %3286 }
 0x452   : > { %v1937_v22 = vmul.f32 %v3287_v14, %v4413_v26 }
 0x453   : > { %v1945_v21 = vpack.c.bf16 %v1936_v20, %v1935_v45 }
 0x454   : > { %v3289_v30 = vpop.eup %3288 }
 0x455   : > { %2970 = vmatprep.mubr.bf16.mxu1 %v1945_v21  ;;  %v1938_v50 = vmul.f32 %v3289_v30, %v4417_v29 }
 0x457   : > { %v1946_v25 = vpack.c.bf16 %v1938_v50, %v1937_v22 }
 0x459   : > { %2971 = vmatmul.mubr.bf16.gmra.mrb[36].mxu1 %v1946_v25 }
 0x514   : > { %v2960_v33 = vpop.f32.mrb[32].mxu0 }
 0x515   : > { %v1989_v27 = vpop.f32.mrb[33].mxu0 }
 0x516   : > { %v2961_v31 = vpop.f32.mrb[34].mxu0 }
 0x517   : > { %v2053_v32 = vpack.c.bf16 %v2961_v31, %v2960_v33  ;;  %v1992_v34 = vpop.f32.mrb[35].mxu0 }
 0x518   : > { %v2052_v35 = vpack.c.bf16 %v1992_v34, %v1989_v27 }
 0x51a   : > { %2978 = vmatprep.mubr.msk.bf16.mxu0 %vm1521_vm0, %v2052_v35 }
 0x51b   : > { %2979 = vmatmul.mubr.msk.bf16.vlgmr.msra.gmra.mrb[40].mxu0 %vm1521_vm0, %v2053_v32 }
 0x51c   : > { %v2964_v62 = vpop.f32.mrb[36].mxu0 }
 0x51d   : > { %v2005_v28 = vpop.f32.mrb[37].mxu0 }
 0x51e   : > { %v2965_v38 = vpop.f32.mrb[38].mxu0 }
 0x51f   : > { %v2055_v37 = vpack.c.bf16 %v2965_v38, %v2964_v62  ;;  %v2008_v40 = vpop.f32.mrb[39].mxu0 }
 0x520   : > { %v2054_v26 = vpack.c.bf16 %v2008_v40, %v2005_v28 }
 0x522   : > { %2982 = vmatprep.mubr.msk.bf16.mxu0 %vm1521_vm0, %v2054_v26 }
 0x523   : > { %2983 = vmatmul.mubr.msk.bf16.gmra.mrb[44].mxu0 %vm1521_vm0, %v2055_v37 }
 0x524   : > { %v2968_v29 = vpop.f32.mrb[32].mxu1 }
 0x525   : > { %v2021_v41 = vpop.f32.mrb[33].mxu1 }
 0x526   : > { %v2969_v42 = vpop.f32.mrb[34].mxu1 }
 0x527   : > { %v2057_v10 = vpack.c.bf16 %v2969_v42, %v2968_v29  ;;  %v2024_v43 = vpop.f32.mrb[35].mxu1 }
 0x528   : > { %v2056_v44 = vpack.c.bf16 %v2024_v43, %v2021_v41 }
 0x52a   : > { %2986 = vmatprep.mubr.msk.bf16.mxu0 %vm1521_vm0, %v2056_v44 }
 0x52b   : > { %2987 = vmatmul.mubr.msk.bf16.gmra.mrb[48].mxu0 %vm1521_vm0, %v2057_v10 }
 0x52c   : > { %v2972_v46 = vpop.f32.mrb[36].mxu1 }
 0x52d   : > { %v2037_v53 = vpop.f32.mrb[37].mxu1 }
 0x52e   : > { %v2973_v54 = vpop.f32.mrb[38].mxu1 }
 0x52f   : > { %v2059_v23 = vpack.c.bf16 %v2973_v54, %v2972_v46  ;;  %v2040_v58 = vpop.f32.mrb[39].mxu1 }
 0x530   : > { %v2058_v59 = vpack.c.bf16 %v2040_v58, %v2037_v53 }
 0x532   : > { %2990 = vmatprep.mubr.msk.bf16.mxu0 %vm1521_vm0, %v2058_v59 }
 0x533   : > { %2991 = vmatmul.mubr.msk.bf16.gmra.mrb[52].mxu0 %vm1521_vm0, %v2059_v23 }
 0x5ee   : > { %v2980_v49 = vpop.f32.mrb[40].mxu0 }
 0x5ef   : > { %v2134_v55 = vpop.f32.mrb[41].mxu0  ;;  %v2210_v57 = vadd.f32 (!%p2702_p11), %v2980_v49, %v2703_v8 }
 0x5f0   : > { %v2981_v6 = vpop.f32.mrb[42].mxu0  ;;  %v2208_v48 = vadd.f32 (!%p2702_p11), %v2703_v8, %v2134_v55 }
 0x5f1   : > { %v2137_v60 = vpop.f32.mrb[43].mxu0  ;;  %v2211_v9 = vadd.f32 (!%p2702_p11), %v2981_v6, %v2703_v8  ;;  %2226 = vst [vmem:[%s4470_s12 + $0x10] sm:$0xff] (!%p2702_p11), %v2210_v57 }
 0x5f2   : > { %v2209_v61 = vadd.f32 (!%p2702_p11), %v2703_v8, %v2137_v60  ;;  %2224 = vst [vmem:[%s4470_s12] sm:$0xff] (!%p2702_p11), %v2208_v48 }
 0x5f3   : > { %2227 = vst [vmem:[%s4470_s12 + $0x18] sm:$0xff] (!%p2702_p11), %v2211_v9 }
 0x5f4   : > { %2225 = vst [vmem:[%s4470_s12 + $0x8] sm:$0xff] (!%p2702_p11), %v2209_v61 }
 0x5f6   : > { %v4448_v63 = vpop.f32.mrb[44].mxu0 }
 0x5f7   : > { %v2150_v0 = vpop.f32.mrb[45].mxu0  ;;  %v2214_v12 = vadd.f32 (!%p2702_p11), %v4448_v63, %v2703_v8 }
 0x5f8   : > { %v4450_v24 = vpop.f32.mrb[46].mxu0  ;;  %v2212_v1 = vadd.f32 (!%p2702_p11), %v2703_v8, %v2150_v0 }
 0x5f9   : > { %v2153_v39 = vpop.f32.mrb[47].mxu0  ;;  %v2215_v13 = vadd.f32 (!%p2702_p11), %v4450_v24, %v2703_v8  ;;  %2230 = vst [vmem:[%s4470_s12 + $0x30] sm:$0xff] (!%p2702_p11), %v2214_v12 }
 0x5fa   : > { %v2213_v11 = vadd.f32 (!%p2702_p11), %v2703_v8, %v2153_v39  ;;  %2228 = vst [vmem:[%s4470_s12 + $0x20] sm:$0xff] (!%p2702_p11), %v2212_v1 }
 0x5fb   : > { %2231 = vst [vmem:[%s4470_s12 + $0x38] sm:$0xff] (!%p2702_p11), %v2215_v13 }
 0x5fc   : > { %2229 = vst [vmem:[%s4470_s12 + $0x28] sm:$0xff] (!%p2702_p11), %v2213_v11 }
 0x5fe   : > { %v4452_v47 = vpop.f32.mrb[48].mxu0 }
 0x5ff   : > { %v4454_v17 = vpop.f32.mrb[49].mxu0  ;;  %v2218_v4 = vadd.f32 (!%p2702_p11), %v4452_v47, %v2703_v8 }
 0x600   : > { %v4456_v56 = vpop.f32.mrb[50].mxu0  ;;  %v2216_v51 = vadd.f32 (!%p2702_p11), %v2703_v8, %v4454_v17 }
 0x601   : > { %v4458_v36 = vpop.f32.mrb[51].mxu0  ;;  %v2219_v3 = vadd.f32 (!%p2702_p11), %v4456_v56, %v2703_v8  ;;  %2234 = vst [vmem:[%s4470_s12 + $0x50] sm:$0xff] (!%p2702_p11), %v2218_v4 }
 0x602   : > { %v2217_v15 = vadd.f32 (!%p2702_p11), %v2703_v8, %v4458_v36  ;;  %2232 = vst [vmem:[%s4470_s12 + $0x40] sm:$0xff] (!%p2702_p11), %v2216_v51 }
 0x603   : > { %2200 = sbr.rel (%p2702_p11) target bundleno = 1549 (0x60d), region = 96  ;;  %2235 = vst [vmem:[%s4470_s12 + $0x58] sm:$0xff] (!%p2702_p11), %v2219_v3 }
 0x604   : > { %2233 = vst [vmem:[%s4470_s12 + $0x48] sm:$0xff] (!%p2702_p11), %v2217_v15 }
 0x606   : > { %v4460_v52 = vpop.f32.mrb[52].mxu0 }
 0x607   : > { %v4462_v2 = vpop.f32.mrb[53].mxu0  ;;  %v2222_v19 = vadd.f32 (!%p2702_p11), %v4460_v52, %v2703_v8 }
 0x608   : > { %v4464_v5 = vpop.f32.mrb[54].mxu0  ;;  %v2220_v16 = vadd.f32 (!%p2702_p11), %v2703_v8, %v4462_v2 }
 0x609   : > { %v4466_v7 = vpop.f32.mrb[55].mxu0  ;;  %v2223_v45 = vadd.f32 (!%p2702_p11), %v4464_v5, %v2703_v8  ;;  %2238 = vst [vmem:[%s4470_s12 + $0x70] sm:$0xff] (!%p2702_p11), %v2222_v19 }
 0x60a   : > { %v2221_v18 = vadd.f32 %v2703_v8, %v4466_v7  ;;  %2236 = vst [vmem:[%s4470_s12 + $0x60] sm:$0xff] %v2220_v16 }
 0x60b   : > { %2239 = vst [vmem:[%s4470_s12 + $0x78] sm:$0xff] %v2223_v45 }
 0x60c   : > { %2237 = vst [vmem:[%s4470_s12 + $0x68] sm:$0xff] %v2221_v18 }
 0x60d PF: > { %s4812_s14 = sld [smem:[#allocation22_spill]] }
 0x613   : > { %p2704_p8 = scmp.le.s32.totalorder %s4812_s14, 0 }
 0x614   : > { %v2244_v20 = vld [vmem:[%s4470_s12] sm:$0xff] (!%p2704_p8)  ;;  %v2245_v14 = vld [vmem:[%s4470_s12 + $0x8] sm:$0xff] (!%p2704_p8)  ;;  %v2246_v21 = vld [vmem:[%s4470_s12 + $0x10] sm:$0xff] (!%p2704_p8) }
 0x615   : > { %2243 = sbr.rel (%p2704_p8) target bundleno = 1567 (0x61f), region = 100  ;;  %v2260_v30 = vadd.f32 (!%p2704_p8), %v2244_v20, %v2134_v55  ;;  %v2261_v22 = vadd.f32 (!%p2704_p8), %v2245_v14, %v2137_v60  ;;  %v2262_v50 = vadd.f32 (!%p2704_p8), %v2980_v49, %v2246_v21  ;;  %v2247_v25 = vld [vmem:[%s4470_s12 + $0x18] sm:$0xff] (!%p2704_p8)  ;;  %v2248_v33 = vld [vmem:[%s4470_s12 + $0x20] sm:$0xff] (!%p2704_p8)  ;;  %v2249_v27 = vld [vmem:[%s4470_s12 + $0x28] sm:$0xff] (!%p2704_p8) }
 0x616   : > { %v2263_v31 = vadd.f32 (!%p2704_p8), %v2981_v6, %v2247_v25  ;;  %v2264_v32 = vadd.f32 (!%p2704_p8), %v2248_v33, %v2150_v0  ;;  %v2265_v34 = vadd.f32 (!%p2704_p8), %v2249_v27, %v2153_v39  ;;  %v2250_v35 = vld [vmem:[%s4470_s12 + $0x30] sm:$0xff] (!%p2704_p8)  ;;  %v2251_v62 = vld [vmem:[%s4470_s12 + $0x38] sm:$0xff] (!%p2704_p8)  ;;  %v2252_v28 = vld [vmem:[%s4470_s12 + $0x40] sm:$0xff] (!%p2704_p8) }
 0x617   : > { %2276 = vst [vmem:[%s4470_s12] sm:$0xff] (!%p2704_p8), %v2260_v30  ;;  %2277 = vst [vmem:[%s4470_s12 + $0x8] sm:$0xff] (!%p2704_p8), %v2261_v22  ;;  %v2266_v38 = vadd.f32 (!%p2704_p8), %v4448_v63, %v2250_v35  ;;  %v2267_v37 = vadd.f32 (!%p2704_p8), %v4450_v24, %v2251_v62  ;;  %v2268_v40 = vadd.f32 (!%p2704_p8), %v2252_v28, %v4454_v17  ;;  %v2253_v26 = vld [vmem:[%s4470_s12 + $0x48] sm:$0xff] (!%p2704_p8)  ;;  %v2254_v29 = vld [vmem:[%s4470_s12 + $0x50] sm:$0xff] (!%p2704_p8) }
 0x618   : > { %2278 = vst [vmem:[%s4470_s12 + $0x10] sm:$0xff] (!%p2704_p8), %v2262_v50  ;;  %v2255_v41 = vld [vmem:[%s4470_s12 + $0x58] sm:$0xff] (!%p2704_p8)  ;;  %2279 = vst [vmem:[%s4470_s12 + $0x18] sm:$0xff] (!%p2704_p8), %v2263_v31  ;;  %v2269_v42 = vadd.f32 (!%p2704_p8), %v2253_v26, %v4458_v36  ;;  %v2270_v10 = vadd.f32 (!%p2704_p8), %v4452_v47, %v2254_v29  ;;  %v2256_v44 = vld [vmem:[%s4470_s12 + $0x60] sm:$0xff] (!%p2704_p8) }
 0x619   : > { %2280 = vst [vmem:[%s4470_s12 + $0x20] sm:$0xff] (!%p2704_p8), %v2264_v32  ;;  %2281 = vst [vmem:[%s4470_s12 + $0x28] sm:$0xff] (!%p2704_p8), %v2265_v34  ;;  %v2271_v43 = vadd.f32 (!%p2704_p8), %v4456_v56, %v2255_v41  ;;  %v2257_v46 = vld [vmem:[%s4470_s12 + $0x68] sm:$0xff] (!%p2704_p8)  ;;  %v2258_v53 = vld [vmem:[%s4470_s12 + $0x70] sm:$0xff] (!%p2704_p8)  ;;  %v2272_v54 = vadd.f32 (!%p2704_p8), %v2256_v44, %v4462_v2 }
 0x61a   : > { %2282 = vst [vmem:[%s4470_s12 + $0x30] sm:$0xff] (!%p2704_p8), %v2266_v38  ;;  %2283 = vst [vmem:[%s4470_s12 + $0x38] sm:$0xff] (!%p2704_p8), %v2267_v37  ;;  %v2273_v23 = vadd.f32 (!%p2704_p8), %v2257_v46, %v4466_v7  ;;  %v2274_v58 = vadd.f32 (!%p2704_p8), %v4460_v52, %v2258_v53  ;;  %v2259_v59 = vld [vmem:[%s4470_s12 + $0x78] sm:$0xff] (!%p2704_p8) }
 0x61b   : > { %2284 = vst [vmem:[%s4470_s12 + $0x40] sm:$0xff] (!%p2704_p8), %v2268_v40  ;;  %2285 = vst [vmem:[%s4470_s12 + $0x48] sm:$0xff] (!%p2704_p8), %v2269_v42  ;;  %v2275_v49 = vadd.f32 (!%p2704_p8), %v4464_v5, %v2259_v59 }
 0x61c   : > { %2286 = vst [vmem:[%s4470_s12 + $0x50] sm:$0xff] %v2270_v10  ;;  %2287 = vst [vmem:[%s4470_s12 + $0x58] sm:$0xff] %v2271_v43 }
 0x61d   : > { %2288 = vst [vmem:[%s4470_s12 + $0x60] sm:$0xff] %v2272_v54  ;;  %2289 = vst [vmem:[%s4470_s12 + $0x68] sm:$0xff] %v2273_v23 }
 0x61e   : > { %2290 = vst [vmem:[%s4470_s12 + $0x70] sm:$0xff] %v2274_v58  ;;  %2291 = vst [vmem:[%s4470_s12 + $0x78] sm:$0xff] %v2275_v49 }
 0x61f PF: > { %s4813_s3 = sld [smem:[#allocation23_spill]]  ;;  %s4814_s6 = sld [smem:[#allocation28_spill]] }
 0x620   : > { %s4815_s2 = sld [smem:[#allocation48_spill]]  ;;  %s2311_s15 = sshll.u32 %s4470_s12, 4  ;;  %s4552_s15 = int_to_ptr.vmem [resolvable:$true] %s2311_s15 }
 0x621   : > { %s2293_s1 = scalar_lea.sflag [#allocation4], %s4025_s7  ;;  %s3408_s8 = scalar_lea.vmem %s4552_s15, 2048 }
 0x622   : > { %p3409_p1 = scmp.ne.s32.totalorder %s4552_s15, %s3408_s8  ;;  %s3608_s5 = smov [#allocation10]  }
 0x623   : > { %s3412_s27 = sshll.u32 %s3608_s5, 4  ;;  %s3413_s27 = int_to_ptr.vmem [resolvable:$false] %s3412_s27 }
 0x624   : > { %s3414_s18 = scalar_lea.vmem %s3413_s27, 4096  ;;  %p3415_p3 = scmp.lt.s32.totalorder %s4552_s15, %s3413_s27 }
 0x625   : > { %s2723_s19 = sshll.u32 %s4813_s3, 11  ;;  %p4816_p13 = scmp.ne.s32.totalorder %s4814_s6, 0 }
 0x626   : > { %s4549_s24 = scalar_lea.hbm %s4815_s2, %s2723_s19  ;;  %p3416_p5 = scmp.lt.s32.totalorder %s3414_s18, %s3408_s8 }
 0x627   : > { %p3410_p0 = pnand %p3409_p1, %p4816_p13 }
 0x628   : > { %p3417_p6 = por %p3416_p5, %p3415_p3 }
 0x629   : > { %p3411_p7 = pneg %p3410_p0 }
 0x62b   : > { %p3418_p2 = pnand %p3417_p6, %p3411_p7 }
 0x62d   : > { %3421 = shalt.err (!%p3418_p2)
}
 0x62e   : > { %s3422_s12 = scalar_lea.hbm %s4549_s24, 2048  ;;  %s3426_s11 = scalar_lea.hbm %s4815_s2, 4096 }
 0x62f   : > { %p3423_p12 = scmp.ne.s32.totalorder %s4549_s24, %s3422_s12  ;;  %p3427_p10 = scmp.lt.u32.totalorder %s4549_s24, %s4815_s2 }
 0x630   : > { %p3428_p11 = scmp.lt.u32.totalorder %s3426_s11, %s3422_s12  ;;  %p3430_p1 = scmp.lt.u32.totalorder %s3422_s12, %s4549_s24 }
 0x631   : > { %p3424_p9 = pnand %p3423_p12, %p4816_p13 }
 0x632   : > { %p3429_p8 = por %p3428_p11, %p3427_p10 }
 0x633   : > { %p3425_p4 = pneg %p3424_p9 }
 0x634   : > { %p3431_p0 = por %p3430_p1, %p3429_p8 }
 0x636   : > { %p3432_p7 = pnand %p3431_p0, %p3425_p4 }
 0x638   : > { %3435 = shalt.err (!%p3432_p7)
}
 0x639   : > { %s3609_s8 = smov 128   ;;  %s4817_s27 = sld [smem:[#allocation22_spill]] }
 0x63a   : > { %s4818_s18 = sld [smem:[#allocation20_spill]]  ;;  %s4819_s14 = sld [smem:[#allocation30_spill]] }
 0x63b   : > { %s3610_s19 = smov 8   ;;  %s2710_s11 = sshll.u32 %s4813_s3, 6 }
 0x63c   : > { %3028 = dma.vmem_to_hbm [thread:$0]  (%p4816_p13), %s4552_s15, 2048, %s4549_s24, %s2293_s1, %s3609_s8, %s3609_s8, %s3610_s19  }
 0x63d   : > { %s2329_s5 = sshll.u32 %s4239_s10, 4  ;;  %s4820_s17 = sld [smem:[#allocation49_spill]]  ;;  %s4584_s5 = int_to_ptr.vmem [resolvable:$true] %s2329_s5 }
 0x63e   : > { %s3436_s7 = scalar_lea.vmem %s4584_s5, 2048  ;;  %s3611_s10 = smov [#allocation11]  }
 0x63f   : > { %s2709_s12 = sshll.u32 %s4817_s27, 4  ;;  %p3437_p13 = scmp.ne.s32.totalorder %s4584_s5, %s3436_s7 }
 0x640   : > { %s2326_s0 = sadd.s32 %s2710_s11, %s2709_s12  ;;  %s4821_s6 = sand.u32 1, %s4818_s18  }
 0x641   : > { %s2711_s4 = sshll.u32 %s2326_s0, 7  ;;  %s4593_s29 = scalar_lea.sflag [#allocation12], %s4821_s6 }
 0x642   : > { %p4822_p3 = scmp.ne.s32.totalorder %s4819_s14, 0  ;;  %s3440_s3 = sshll.u32 %s3611_s10, 4  ;;  %s3441_s3 = int_to_ptr.vmem [resolvable:$false] %s3440_s3 }
 0x643   : > { %s4589_s30 = scalar_lea.hbm %s4820_s17, %s2711_s4  ;;  %s3442_s24 = scalar_lea.vmem %s3441_s3, 4096 }
 0x644   : > { %p3438_p5 = pnand %p3437_p13, %p4822_p3  ;;  %p3443_p2 = scmp.lt.s32.totalorder %s4584_s5, %s3441_s3 }
 0x645   : > { %p3444_p12 = scmp.lt.s32.totalorder %s3442_s24, %s3436_s7 }
 0x646   : > { %p3439_p6 = pneg %p3438_p5 }
 0x647   : > { %p3445_p9 = por %p3444_p12, %p3443_p2 }
 0x649   : > { %p3446_p4 = pnand %p3445_p9, %p3439_p6 }
 0x64b   : > { %3449 = shalt.err (!%p3446_p4)
}
 0x64c   : > { %s3450_s9 = scalar_lea.hbm %s4589_s30, 2048  ;;  %s3454_s15 = scalar_lea.hbm %s4820_s17, 16384 }
 0x64d   : > { %p3451_p10 = scmp.ne.s32.totalorder %s4589_s30, %s3450_s9  ;;  %p3455_p1 = scmp.lt.u32.totalorder %s4589_s30, %s4820_s17 }
 0x64e   : > { %p3456_p0 = scmp.lt.u32.totalorder %s3454_s15, %s3450_s9  ;;  %p3458_p13 = scmp.lt.u32.totalorder %s3450_s9, %s4589_s30 }
 0x64f   : > { %p3452_p11 = pnand %p3451_p10, %p4822_p3 }
 0x650   : > { %p3457_p7 = por %p3456_p0, %p3455_p1 }
 0x651   : > { %p3453_p8 = pneg %p3452_p11 }
 0x652   : > { %p3459_p5 = por %p3458_p13, %p3457_p7 }
 0x654   : > { %p3460_p6 = pnand %p3459_p5, %p3453_p8 }
 0x656   : > { %3463 = shalt.err (!%p3460_p6)
}
 0x657   : > { %3029 = dma.vmem_to_hbm [thread:$0]  (%p4822_p3), %s4584_s5, 2048, %s4589_s30, %s4593_s29, %s3609_s8, %s3609_s8, %s3610_s19  }
 0x658 PF: > { %s4823_s18 = sld [smem:[#allocation21_spill]]  ;;  %s4824_s12 = sld [smem:[#allocation29_spill]] }
 0x659   : > { %p3056_p2 = scmp.ge.s32.totalorder %s3598_s16, 2 }
 0x65e   : > { %s2344_s11 = sand.u32 1, %s4823_s18   ;;  %p4825_p12 = scmp.ne.s32.totalorder %s4824_s12, 0 }
 0x65f   : > { %s2345_s0 = scalar_lea.sflag [#allocation4], %s2344_s11 }
 0x660   : > { %p3047_p9 = pnand %p3056_p2, %p4825_p12 }
 0x662   : > { %3537 = dma.done.wait (!%p3047_p9), %s2345_s0, 2048  }
 0x663   : > { %3539 = vsyncadd (!%p3047_p9), %s2345_s0, 4294965248  ;;  %s4826_s6 = sld [smem:[#allocation19_spill]]  ;;  %s4827_s14 = sld [smem:[#allocation31_spill]] }
 0x669   : > { %s2353_s7 = sand.u32 1, %s4826_s6   ;;  %p4828_p4 = scmp.ne.s32.totalorder %s4827_s14, 0 }
 0x66a   : > { %s2354_s10 = scalar_lea.sflag [#allocation12], %s2353_s7 }
 0x66b   : > { %p3050_p10 = pnand %p3056_p2, %p4828_p4 }
 0x66d   : > { %3541 = dma.done.wait (!%p3050_p10), %s2354_s10, 2048  }
 0x66e   : > { %3543 = vsyncadd (!%p3050_p10), %s2354_s10, 4294965248  ;;  %s39_s16 = sadd.s32 1, %s3598_s16   ;;  %s4830_s18 = sld [smem:[#allocation20_spill]] }
 0x66f   : > { %p4628_p3 = scmp.ge.s32.totalorder %s39_s16, 10   ;;  %s4831_s30 = smov %s3966_s21 }
 0x670   : > { %s4832_s27 = sld [smem:[#allocation24_spill]]  ;;  %s4833_s8 = sld [smem:[#allocation25_spill]] }
 0x671   : > { %s4834_s5 = sld [smem:[#allocation32_spill]]  ;;  %s4835_s3 = sld [smem:[#allocation33_spill]] }
 0x672   : > { %s4837_s19 = smov %s3554_s20  ;;  %s4838_s20 = smov %s3981_s13 }
 0x673   : > { %s4839_s21 = smov %s3562_s22  ;;  %s4840_s22 = smov %s3566_s23 }
 0x674   : > { %s4841_s23 = smov %s4831_s30  ;;  %s4842_s24 = smov %s3574_s25 }
 0x675   : > { %s4843_s25 = smov %s3578_s26  ;;  %s4844_s26 = smov %s3978_s28 }
 0x676   : > { %s4845_s28 = smov %s4833_s8  ;;  %38 = sbr.rel (!%p4628_p3) target bundleno = 32 (0x20), region = 201 }
 0x677   : > { %s4846_s29 = smov %s4834_s5  ;;  %s4847_s30 = smov %s4835_s3 }
 0x67d   :  { %2359 = vsyncpa [#allocation3], 1 }
 0x67e   :  { %2361 = vsyncpa [#allocation3 + $0x1], 1 }
 0x67f   :  { %2362 = vsyncpa [#allocation6], 1 }
 0x680   :  { %2364 = vsyncpa [#allocation6 + $0x1], 1 }
 0x681   :  { %2365 = vsyncpa [#allocation9], 1 }
 0x682   :  { %2366 = vsyncpa [#allocation4], 1 }
 0x683   :  { %2368 = vsyncpa [#allocation4 + $0x1], 1 }
 0x684   :  { %2369 = vsyncpa [#allocation12], 1 }
 0x685   :  { %2371 = vsyncpa [#allocation12 + $0x1], 1 }

</bundles_post_ra>
